<compile_context>
chip_gen: v6e
topology: v6e:2x2x1
jax: 0.10.0
libtpu: 0.0.40
codegen_flags: <defaults>
</compile_context>

<pallas_src>
import functools

import numpy as np
import jax
import jax.numpy as jnp
from jax import lax
from jax.experimental import pallas as pl
from jax.experimental.pallas import tpu as pltpu


def _combine(mat, vec):
    # Apply a (b, b) combination matrix to (b, C) per-channel statistics without the
    # MXU (shapes are tiny): result[t, c] = sum_i mat[t, i] * vec[i, c]
    return jnp.sum(mat[:, :, None] * vec[None, :, :], axis=1)


def _online_norm_kernel(x_ref, m_p_ref, var_p_ref, m_ref, var_ref,
                        w_ref, bias_ref, A_ref, B_ref, Sh_ref, E_ref,
                        out_ref, m_p_new_ref, var_p_new_ref, m_new_ref, var_new_ref,
                        s1_ref, s2_ref, scale_ref, shift_ref,
                        *, afwd, eps, mom_b, inv_hw, inv_c):
    phase = pl.program_id(0)
    t = pl.program_id(1)

    # ----- phase 0: stream x tiles, accumulate sum(x) and sum(x^2) per (n, c) -----
    @pl.when(jnp.logical_and(phase == 0, t == 0))
    def _init():
        s1_ref[...] = jnp.zeros_like(s1_ref)
        s2_ref[...] = jnp.zeros_like(s2_ref)

    @pl.when(phase == 0)
    def _accum():
        x = x_ref[...]                                    # (N, C, block_hw)
        s1_ref[...] += jnp.sum(x, axis=-1)
        s2_ref[...] += jnp.sum(x * x, axis=-1)

    # ----- phase boundary: fold all statistics into per-(n, c) scale / shift -----
    @pl.when(jnp.logical_and(phase == 1, t == 0))
    def _stats():
        mu = s1_ref[...] * inv_hw                         # (N, C)
        var = s2_ref[...] * inv_hw - mu * mu              # single-pass moments

        A, B, Sh, E = A_ref[...], B_ref[...], Sh_ref[...], E_ref[...]

        # streaming mean (lin_momentum; (1-afwd) is pre-folded into A, B)
        mu_b = mom_b * m_ref[...] + _combine(A, m_p_ref[...]) + _combine(B, mu)
        stale_mu = _combine(Sh, mu_b) + _combine(E, m_ref[...])
        d = mu - stale_mu
        var_cur = var + afwd * d * d
        # streaming variance (lin_momentum)
        var_b = mom_b * var_ref[...] + _combine(A, var_p_ref[...]) + _combine(B, var_cur)
        stale_var = _combine(Sh, var_b) + _combine(E, var_ref[...])

        inv = lax.rsqrt(stale_var + eps)                  # 1 / sqrt(_var_b + eps)
        w = w_ref[...]                                    # (1, C) gamma
        b = bias_ref[...]                                 # (1, C) beta
        g = w * inv                                       # (N, C)

        # analytic LayerScaling second moment, averaged over C
        e2 = g * g * (var + d * d) + 2.0 * g * b * d + b * b
        m2 = jnp.sum(e2, axis=1, keepdims=True) * inv_c   # (N, 1)
        ls = lax.rsqrt(m2 + eps)                          # (N, 1)

        scale_ref[...] = g * ls                           # per-(n, c) fused scale
        shift_ref[...] = (b - g * stale_mu) * ls          # per-(n, c) fused shift

        # updated streaming buffers (module state after this forward step)
        m_p_new_ref[...] = mu
        var_p_new_ref[...] = var_cur
        m_new_ref[...] = mu_b
        var_new_ref[...] = var_b

    # ----- phase 1: single fused elementwise pass: out = x * scale + shift -----
    @pl.when(phase == 1)
    def _apply():
        out_ref[...] = (x_ref[...] * scale_ref[...][:, :, None]
                        + shift_ref[...][:, :, None])


def _make_lin_momentum_mats(b, momentum):
    # Dense equivalents of torch's conv1d-based lin_momentum:
    #   curr  = momentum**b * stream + A @ m_prev + B @ mu_curr   ((1-momentum) folded in)
    #   stale = Sh @ curr + E @ stream                            (shift-by-one)
    A = np.zeros((b, b), np.float32)
    B = np.zeros((b, b), np.float32)
    Sh = np.zeros((b, b), np.float32)
    E = np.zeros((b, b), np.float32)
    for t in range(b):
        for i in range(t + 1, b):
            A[t, i] = momentum ** (b - i + t)
        for i in range(0, t + 1):
            B[t, i] = momentum ** (t - i)
        if t >= 1:
            Sh[t, t - 1] = 1.0
    E[0, b - 1] = 1.0
    A *= (1.0 - momentum)
    B *= (1.0 - momentum)
    return A, B, Sh, E


def _pick_block_hw(hw, n, c, target_bytes=8 << 20):
    # Largest divisor of HW that is a multiple of 128 and keeps one (N, C, block) tile
    # within the per-buffer budget; fall back to the full dim (exempt from (8,128)).
    if hw % 128 != 0:
        return hw
    max_elems = max(128, ((target_bytes // (4 * n * c)) // 128) * 128)
    best, t = 128, 128
    while t <= hw and t <= max_elems:
        if hw % t == 0:
            best = t
        t += 128
    return best


def online_norm_2d(x, state, weight, bias, *, afwd=0.999, eps=1e-5, block_hw=None):
    """Training-mode forward of OnlineNorm2D. x: (N, C, H, W) f32."""
    N, C, H, W = x.shape
    HW = H * W
    x3 = x.reshape(N, C, HW).astype(jnp.float32)

    if block_hw is None:
        block_hw = _pick_block_hw(HW, N, C)
    assert HW % block_hw == 0, "block_hw must divide H*W"
    n_tiles = HW // block_hw

    A, B, Sh, E = (jnp.asarray(m) for m in _make_lin_momentum_mats(N, afwd))
    w2 = weight.reshape(1, C).astype(jnp.float32)
    b2 = bias.reshape(1, C).astype(jnp.float32)

    kernel = functools.partial(
        _online_norm_kernel,
        afwd=float(afwd), eps=float(eps), mom_b=float(afwd) ** N,
        inv_hw=1.0 / float(HW), inv_c=1.0 / float(C))

    # lane-dense tiles over the flattened spatial axis; small arrays stay resident
    big_in = pl.BlockSpec((N, C, block_hw), lambda p, t: (0, 0, t))
    big_out = pl.BlockSpec((N, C, block_hw), lambda p, t: (0, 0, p * t))
    small_nc = pl.BlockSpec((N, C), lambda p, t: (0, 0))
    small_1c = pl.BlockSpec((1, C), lambda p, t: (0, 0))
    small_nn = pl.BlockSpec((N, N), lambda p, t: (0, 0))

    out_shapes = (
        jax.ShapeDtypeStruct((N, C, HW), jnp.float32),   # normalized output
        jax.ShapeDtypeStruct((N, C), jnp.float32),       # new m_p   (= mu)
        jax.ShapeDtypeStruct((N, C), jnp.float32),       # new var_p (= var_current)
        jax.ShapeDtypeStruct((N, C), jnp.float32),       # new m     (= mu_b)
        jax.ShapeDtypeStruct((N, C), jnp.float32),       # new var   (= var_b)
    )

    # VMEM budget: x + out tiles, double-buffered, plus headroom for the tiny arrays.
    block_bytes = 4 * N * C * block_hw
    vmem_limit = int(min(100 * 1024 * 1024,
                         max(4 * 1024 * 1024, 8 * block_bytes + 2 * 1024 * 1024)))

    outs = pl.pallas_call(
        kernel,
        out_shape=out_shapes,
        grid=(2, n_tiles),                               # (phase, spatial tile)
        in_specs=[big_in, small_nc, small_nc, small_nc, small_nc,
                  small_1c, small_1c, small_nn, small_nn, small_nn, small_nn],
        out_specs=(big_out, small_nc, small_nc, small_nc, small_nc),
        scratch_shapes=[pltpu.VMEM((N, C), jnp.float32),   # sum(x)
                        pltpu.VMEM((N, C), jnp.float32),   # sum(x^2)
                        pltpu.VMEM((N, C), jnp.float32),   # fused scale
                        pltpu.VMEM((N, C), jnp.float32)],  # fused shift
        compiler_params=pltpu.CompilerParams(
            dimension_semantics=("arbitrary", "arbitrary"),
            vmem_limit_bytes=vmem_limit),
    )(x3, state['m_p'], state['var_p'], state['m'], state['var'],
      w2, b2, A, B, Sh, E)

    out3, m_p_new, var_p_new, m_new, var_new = outs
    new_state = dict(m=m_new, var=var_new, m_p=m_p_new, var_p=var_p_new)
    return out3.reshape(N, C, H, W), new_state


# ----------------------- pure-JAX reference (for checking) -----------------------
def _ref_lin_momentum(prev, curr, stream, momentum, b):
    cat = jnp.concatenate([prev[1:], curr], axis=0)                  # (2b-1, C)
    w = momentum ** jnp.arange(b - 1, -1, -1, dtype=jnp.float32)     # conv1d kernel
    tmp = jnp.stack([jnp.sum(w[:, None] * cat[t:t + b], axis=0)
                     for t in range(b)], axis=0)
    new = (momentum ** b) * stream + (1.0 - momentum) * tmp
    stale = jnp.concatenate([stream[-1:], new[:-1]], axis=0)
    return stale, new


def _ref_forward(x, state, weight, bias, afwd=0.999, eps=1e-5):
    N, C, H, W = x.shape
    hw = H * W
    xf = x.reshape(N, C, hw)
    mu = jnp.sum(xf, axis=-1) / hw
    var = jnp.sum((xf - mu[:, :, None]) ** 2, axis=-1) / hw
    stale_mu, _ = _ref_lin_momentum(state['m_p'], mu, state['m'], afwd, N)
    var_cur = var + afwd * (mu - stale_mu) ** 2
    stale_var, _ = _ref_lin_momentum(state['var_p'], var_cur, state['var'], afwd, N)
    out = (x - stale_mu[:, :, None, None]) / jnp.sqrt(stale_var + eps)[:, :, None, None]
    out = out * weight[None, :, None, None] + bias[None, :, None, None]
    m2 = jnp.mean(out.reshape(N, -1) ** 2, axis=1)[:, None, None, None]
    return out / jnp.sqrt(m2 + eps)


if __name__ == "__main__":
    N, C, H, W = 2, 4, 16, 16          # b_size=2, num_features=4
    key = jax.random.PRNGKey(0)
    kx, kw, kb = jax.random.split(key, 3)
    x = jax.random.normal(kx, (N, C, H, W), dtype=jnp.float32)

    # learnable affine params (non-trivial to exercise the analytic LayerScaling path)
    weight = 1.0 + 0.1 * jax.random.normal(kw, (C,), dtype=jnp.float32)
    bias = 0.1 * jax.random.normal(kb, (C,), dtype=jnp.float32)
    # module buffers at their init values (init_norm_params)
    state = dict(
        m=jnp.zeros((N, C), jnp.float32),
        var=jnp.ones((N, C), jnp.float32),
        m_p=jnp.zeros((N, C), jnp.float32),
        var_p=jnp.ones((N, C), jnp.float32),
    )

    # block_hw=128 -> 2 spatial tiles per phase: exercises the streaming accumulation.
    out, new_state = online_norm_2d(x, state, weight, bias,
                                    afwd=0.999, eps=1e-5, block_hw=128)
    out = jax.block_until_ready(out)

    ref = _ref_forward(x, state, weight, bias, afwd=0.999, eps=1e-5)
    err = float(jnp.max(jnp.abs(out - ref)))
    assert out.shape == (N, C, H, W) and out.dtype == jnp.float32
    assert jnp.allclose(out, ref, rtol=1e-4, atol=1e-4), f"max abs err {err}"
    print("KERNEL_OK")
</pallas_src>

<mosaic_0001>
module attributes {stable_mosaic.version = 11 : i64} {
  func.func @_online_norm_kernel(%arg0: i32, %arg1: i32, %arg2: memref<2x4x128xf32, #tpu.memory_space<vmem>>, %arg3: memref<2x4xf32, #tpu.memory_space<vmem>>, %arg4: memref<2x4xf32, #tpu.memory_space<vmem>>, %arg5: memref<2x4xf32, #tpu.memory_space<vmem>>, %arg6: memref<2x4xf32, #tpu.memory_space<vmem>>, %arg7: memref<1x4xf32, #tpu.memory_space<vmem>>, %arg8: memref<1x4xf32, #tpu.memory_space<vmem>>, %arg9: memref<2x2xf32, #tpu.memory_space<vmem>>, %arg10: memref<2x2xf32, #tpu.memory_space<vmem>>, %arg11: memref<2x2xf32, #tpu.memory_space<vmem>>, %arg12: memref<2x2xf32, #tpu.memory_space<vmem>>, %arg13: memref<2x4x128xf32, #tpu.memory_space<vmem>>, %arg14: memref<2x4xf32, #tpu.memory_space<vmem>>, %arg15: memref<2x4xf32, #tpu.memory_space<vmem>>, %arg16: memref<2x4xf32, #tpu.memory_space<vmem>>, %arg17: memref<2x4xf32, #tpu.memory_space<vmem>>, %arg18: memref<2x4xf32, #tpu.memory_space<vmem>>, %arg19: memref<2x4xf32, #tpu.memory_space<vmem>>, %arg20: memref<2x4xf32, #tpu.memory_space<vmem>>, %arg21: memref<2x4xf32, #tpu.memory_space<vmem>>) attributes {dimension_semantics = [#tpu.dimension_semantics<arbitrary>, #tpu.dimension_semantics<arbitrary>], iteration_bounds = array<i64: 2, 2>, scalar_prefetch = 0 : i64, scratch_operands = 4 : i64, tpu.core_type = #tpu.core_type<tc>, window_params = [{transform_indices = @transform_0, window_bounds = array<i64: 2, 4, 128>}, {pipeline_mode = #tpu.pipeline_mode<synchronous>, transform_indices = @transform_1, window_bounds = array<i64: 2, 4>}, {pipeline_mode = #tpu.pipeline_mode<synchronous>, transform_indices = @transform_2, window_bounds = array<i64: 2, 4>}, {pipeline_mode = #tpu.pipeline_mode<synchronous>, transform_indices = @transform_3, window_bounds = array<i64: 2, 4>}, {pipeline_mode = #tpu.pipeline_mode<synchronous>, transform_indices = @transform_4, window_bounds = array<i64: 2, 4>}, {pipeline_mode = #tpu.pipeline_mode<synchronous>, transform_indices = @transform_5, window_bounds = array<i64: 1, 4>}, {pipeline_mode = #tpu.pipeline_mode<synchronous>, transform_indices = @transform_6, window_bounds = array<i64: 1, 4>}, {pipeline_mode = #tpu.pipeline_mode<synchronous>, transform_indices = @transform_7, window_bounds = array<i64: 2, 2>}, {pipeline_mode = #tpu.pipeline_mode<synchronous>, transform_indices = @transform_8, window_bounds = array<i64: 2, 2>}, {pipeline_mode = #tpu.pipeline_mode<synchronous>, transform_indices = @transform_9, window_bounds = array<i64: 2, 2>}, {pipeline_mode = #tpu.pipeline_mode<synchronous>, transform_indices = @transform_10, window_bounds = array<i64: 2, 2>}, {transform_indices = @transform_11, window_bounds = array<i64: 2, 4, 128>}, {pipeline_mode = #tpu.pipeline_mode<synchronous>, transform_indices = @transform_12, window_bounds = array<i64: 2, 4>}, {pipeline_mode = #tpu.pipeline_mode<synchronous>, transform_indices = @transform_13, window_bounds = array<i64: 2, 4>}, {pipeline_mode = #tpu.pipeline_mode<synchronous>, transform_indices = @transform_14, window_bounds = array<i64: 2, 4>}, {pipeline_mode = #tpu.pipeline_mode<synchronous>, transform_indices = @transform_15, window_bounds = array<i64: 2, 4>}]} {
    %c0_i32 = arith.constant 0 : i32
    %0 = arith.cmpi eq, %arg0, %c0_i32 : i32
    %c0_i32_0 = arith.constant 0 : i32
    %1 = arith.cmpi eq, %arg1, %c0_i32_0 : i32
    %2 = arith.andi %0, %1 : i1
    %3 = arith.extui %2 : i1 to i32
    %c0_i32_1 = arith.constant 0 : i32
    %4 = arith.cmpi ne, %3, %c0_i32_1 : i32
    scf.if %4 {
      %cst = arith.constant 0.000000e+00 : f32
      %16 = vector.broadcast %cst : f32 to vector<2x4xf32>
      %c0 = arith.constant 0 : index
      %c0_8 = arith.constant 0 : index
      %17 = vector.load %arg18[%c0, %c0_8] : memref<2x4xf32, #tpu.memory_space<vmem>>, vector<2x4xf32>
      tpu.vector_store %arg18[%c0, %c0_8], %16 {strides = array<i32>} : memref<2x4xf32, #tpu.memory_space<vmem>>, vector<2x4xf32>,
      %cst_9 = arith.constant 0.000000e+00 : f32
      %18 = vector.broadcast %cst_9 : f32 to vector<2x4xf32>
      %c0_10 = arith.constant 0 : index
      %c0_11 = arith.constant 0 : index
      %19 = vector.load %arg19[%c0_10, %c0_11] : memref<2x4xf32, #tpu.memory_space<vmem>>, vector<2x4xf32>
      tpu.vector_store %arg19[%c0_10, %c0_11], %18 {strides = array<i32>} : memref<2x4xf32, #tpu.memory_space<vmem>>, vector<2x4xf32>,
    } else {
    }
    %c0_i32_2 = arith.constant 0 : i32
    %5 = arith.cmpi eq, %arg0, %c0_i32_2 : i32
    %6 = arith.extui %5 : i1 to i32
    %c0_i32_3 = arith.constant 0 : i32
    %7 = arith.cmpi ne, %6, %c0_i32_3 : i32
    scf.if %7 {
      %c0 = arith.constant 0 : index
      %c0_8 = arith.constant 0 : index
      %c0_9 = arith.constant 0 : index
      %16 = vector.load %arg2[%c0, %c0_8, %c0_9] : memref<2x4x128xf32, #tpu.memory_space<vmem>>, vector<2x4x128xf32>
      %c0_10 = arith.constant 0 : index
      %c0_11 = arith.constant 0 : index
      %17 = vector.load %arg18[%c0_10, %c0_11] : memref<2x4xf32, #tpu.memory_space<vmem>>, vector<2x4xf32>
      %cst = arith.constant dense<0.000000e+00> : vector<2x4xf32>
      %18 = vector.multi_reduction <add>, %16, %cst [2] : vector<2x4x128xf32> to vector<2x4xf32>
      %19 = arith.addf %17, %18 : vector<2x4xf32>
      %c0_12 = arith.constant 0 : index
      %c0_13 = arith.constant 0 : index
      %20 = vector.load %arg18[%c0_12, %c0_13] : memref<2x4xf32, #tpu.memory_space<vmem>>, vector<2x4xf32>
      tpu.vector_store %arg18[%c0_12, %c0_13], %19 {strides = array<i32>} : memref<2x4xf32, #tpu.memory_space<vmem>>, vector<2x4xf32>,
      %c0_14 = arith.constant 0 : index
      %c0_15 = arith.constant 0 : index
      %21 = vector.load %arg19[%c0_14, %c0_15] : memref<2x4xf32, #tpu.memory_space<vmem>>, vector<2x4xf32>
      %22 = arith.mulf %16, %16 : vector<2x4x128xf32>
      %cst_16 = arith.constant dense<0.000000e+00> : vector<2x4xf32>
      %23 = vector.multi_reduction <add>, %22, %cst_16 [2] : vector<2x4x128xf32> to vector<2x4xf32>
      %24 = arith.addf %21, %23 : vector<2x4xf32>
      %c0_17 = arith.constant 0 : index
      %c0_18 = arith.constant 0 : index
      %25 = vector.load %arg19[%c0_17, %c0_18] : memref<2x4xf32, #tpu.memory_space<vmem>>, vector<2x4xf32>
      tpu.vector_store %arg19[%c0_17, %c0_18], %24 {strides = array<i32>} : memref<2x4xf32, #tpu.memory_space<vmem>>, vector<2x4xf32>,
    } else {
    }
    %c1_i32 = arith.constant 1 : i32
    %8 = arith.cmpi eq, %arg0, %c1_i32 : i32
    %c0_i32_4 = arith.constant 0 : i32
    %9 = arith.cmpi eq, %arg1, %c0_i32_4 : i32
    %10 = arith.andi %8, %9 : i1
    %11 = arith.extui %10 : i1 to i32
    %c0_i32_5 = arith.constant 0 : i32
    %12 = arith.cmpi ne, %11, %c0_i32_5 : i32
    scf.if %12 {
      %c0 = arith.constant 0 : index
      %c0_8 = arith.constant 0 : index
      %16 = vector.load %arg18[%c0, %c0_8] : memref<2x4xf32, #tpu.memory_space<vmem>>, vector<2x4xf32>
      %cst = arith.constant 3.906250e-03 : f32
      %17 = vector.broadcast %cst : f32 to vector<2x4xf32>
      %18 = arith.mulf %16, %17 : vector<2x4xf32>
      %c0_9 = arith.constant 0 : index
      %c0_10 = arith.constant 0 : index
      %19 = vector.load %arg19[%c0_9, %c0_10] : memref<2x4xf32, #tpu.memory_space<vmem>>, vector<2x4xf32>
      %cst_11 = arith.constant 3.906250e-03 : f32
      %20 = vector.broadcast %cst_11 : f32 to vector<2x4xf32>
      %21 = arith.mulf %19, %20 : vector<2x4xf32>
      %22 = arith.mulf %18, %18 : vector<2x4xf32>
      %23 = arith.subf %21, %22 : vector<2x4xf32>
      %c0_12 = arith.constant 0 : index
      %c0_13 = arith.constant 0 : index
      %24 = vector.load %arg9[%c0_12, %c0_13] : memref<2x2xf32, #tpu.memory_space<vmem>>, vector<2x2xf32>
      %c0_14 = arith.constant 0 : index
      %c0_15 = arith.constant 0 : index
      %25 = vector.load %arg10[%c0_14, %c0_15] : memref<2x2xf32, #tpu.memory_space<vmem>>, vector<2x2xf32>
      %c0_16 = arith.constant 0 : index
      %c0_17 = arith.constant 0 : index
      %26 = vector.load %arg11[%c0_16, %c0_17] : memref<2x2xf32, #tpu.memory_space<vmem>>, vector<2x2xf32>
      %c0_18 = arith.constant 0 : index
      %c0_19 = arith.constant 0 : index
      %27 = vector.load %arg12[%c0_18, %c0_19] : memref<2x2xf32, #tpu.memory_space<vmem>>, vector<2x2xf32>
      %c0_20 = arith.constant 0 : index
      %c0_21 = arith.constant 0 : index
      %28 = vector.load %arg5[%c0_20, %c0_21] : memref<2x4xf32, #tpu.memory_space<vmem>>, vector<2x4xf32>
      %cst_22 = arith.constant 0.998000979 : f32
      %29 = vector.broadcast %cst_22 : f32 to vector<2x4xf32>
      %30 = arith.mulf %29, %28 : vector<2x4xf32>
      %c0_23 = arith.constant 0 : index
      %c0_24 = arith.constant 0 : index
      %31 = vector.load %arg3[%c0_23, %c0_24] : memref<2x4xf32, #tpu.memory_space<vmem>>, vector<2x4xf32>
      %32 = vector.shape_cast %24 : vector<2x2xf32> to vector<2x2x1xf32>
      %33 = vector.shape_cast %31 : vector<2x4xf32> to vector<1x2x4xf32>
      %34 = vector.broadcast %32 : vector<2x2x1xf32> to vector<2x2x4xf32>
      %35 = vector.broadcast %33 : vector<1x2x4xf32> to vector<2x2x4xf32>
      %36 = arith.mulf %34, %35 : vector<2x2x4xf32>
      %cst_25 = arith.constant dense<0.000000e+00> : vector<2x4xf32>
      %37 = vector.multi_reduction <add>, %36, %cst_25 [1] : vector<2x2x4xf32> to vector<2x4xf32>
      %38 = arith.addf %30, %37 : vector<2x4xf32>
      %39 = vector.shape_cast %25 : vector<2x2xf32> to vector<2x2x1xf32>
      %40 = vector.shape_cast %18 : vector<2x4xf32> to vector<1x2x4xf32>
      %41 = vector.broadcast %39 : vector<2x2x1xf32> to vector<2x2x4xf32>
      %42 = vector.broadcast %40 : vector<1x2x4xf32> to vector<2x2x4xf32>
      %43 = arith.mulf %41, %42 : vector<2x2x4xf32>
      %cst_26 = arith.constant dense<0.000000e+00> : vector<2x4xf32>
      %44 = vector.multi_reduction <add>, %43, %cst_26 [1] : vector<2x2x4xf32> to vector<2x4xf32>
      %45 = arith.addf %38, %44 : vector<2x4xf32>
      %46 = vector.shape_cast %26 : vector<2x2xf32> to vector<2x2x1xf32>
      %47 = vector.shape_cast %45 : vector<2x4xf32> to vector<1x2x4xf32>
      %48 = vector.broadcast %46 : vector<2x2x1xf32> to vector<2x2x4xf32>
      %49 = vector.broadcast %47 : vector<1x2x4xf32> to vector<2x2x4xf32>
      %50 = arith.mulf %48, %49 : vector<2x2x4xf32>
      %cst_27 = arith.constant dense<0.000000e+00> : vector<2x4xf32>
      %51 = vector.multi_reduction <add>, %50, %cst_27 [1] : vector<2x2x4xf32> to vector<2x4xf32>
      %c0_28 = arith.constant 0 : index
      %c0_29 = arith.constant 0 : index
      %52 = vector.load %arg5[%c0_28, %c0_29] : memref<2x4xf32, #tpu.memory_space<vmem>>, vector<2x4xf32>
      %53 = vector.shape_cast %27 : vector<2x2xf32> to vector<2x2x1xf32>
      %54 = vector.shape_cast %52 : vector<2x4xf32> to vector<1x2x4xf32>
      %55 = vector.broadcast %53 : vector<2x2x1xf32> to vector<2x2x4xf32>
      %56 = vector.broadcast %54 : vector<1x2x4xf32> to vector<2x2x4xf32>
      %57 = arith.mulf %55, %56 : vector<2x2x4xf32>
      %cst_30 = arith.constant dense<0.000000e+00> : vector<2x4xf32>
      %58 = vector.multi_reduction <add>, %57, %cst_30 [1] : vector<2x2x4xf32> to vector<2x4xf32>
      %59 = arith.addf %51, %58 : vector<2x4xf32>
      %60 = arith.subf %18, %59 : vector<2x4xf32>
      %cst_31 = arith.constant 9.990000e-01 : f32
      %61 = vector.broadcast %cst_31 : f32 to vector<2x4xf32>
      %62 = arith.mulf %61, %60 : vector<2x4xf32>
      %63 = arith.mulf %62, %60 : vector<2x4xf32>
      %64 = arith.addf %23, %63 : vector<2x4xf32>
      %c0_32 = arith.constant 0 : index
      %c0_33 = arith.constant 0 : index
      %65 = vector.load %arg6[%c0_32, %c0_33] : memref<2x4xf32, #tpu.memory_space<vmem>>, vector<2x4xf32>
      %cst_34 = arith.constant 0.998000979 : f32
      %66 = vector.broadcast %cst_34 : f32 to vector<2x4xf32>
      %67 = arith.mulf %66, %65 : vector<2x4xf32>
      %c0_35 = arith.constant 0 : index
      %c0_36 = arith.constant 0 : index
      %68 = vector.load %arg4[%c0_35, %c0_36] : memref<2x4xf32, #tpu.memory_space<vmem>>, vector<2x4xf32>
      %69 = vector.shape_cast %24 : vector<2x2xf32> to vector<2x2x1xf32>
      %70 = vector.shape_cast %68 : vector<2x4xf32> to vector<1x2x4xf32>
      %71 = vector.broadcast %69 : vector<2x2x1xf32> to vector<2x2x4xf32>
      %72 = vector.broadcast %70 : vector<1x2x4xf32> to vector<2x2x4xf32>
      %73 = arith.mulf %71, %72 : vector<2x2x4xf32>
      %cst_37 = arith.constant dense<0.000000e+00> : vector<2x4xf32>
      %74 = vector.multi_reduction <add>, %73, %cst_37 [1] : vector<2x2x4xf32> to vector<2x4xf32>
      %75 = arith.addf %67, %74 : vector<2x4xf32>
      %76 = vector.shape_cast %25 : vector<2x2xf32> to vector<2x2x1xf32>
      %77 = vector.shape_cast %64 : vector<2x4xf32> to vector<1x2x4xf32>
      %78 = vector.broadcast %76 : vector<2x2x1xf32> to vector<2x2x4xf32>
      %79 = vector.broadcast %77 : vector<1x2x4xf32> to vector<2x2x4xf32>
      %80 = arith.mulf %78, %79 : vector<2x2x4xf32>
      %cst_38 = arith.constant dense<0.000000e+00> : vector<2x4xf32>
      %81 = vector.multi_reduction <add>, %80, %cst_38 [1] : vector<2x2x4xf32> to vector<2x4xf32>
      %82 = arith.addf %75, %81 : vector<2x4xf32>
      %83 = vector.shape_cast %26 : vector<2x2xf32> to vector<2x2x1xf32>
      %84 = vector.shape_cast %82 : vector<2x4xf32> to vector<1x2x4xf32>
      %85 = vector.broadcast %83 : vector<2x2x1xf32> to vector<2x2x4xf32>
      %86 = vector.broadcast %84 : vector<1x2x4xf32> to vector<2x2x4xf32>
      %87 = arith.mulf %85, %86 : vector<2x2x4xf32>
      %cst_39 = arith.constant dense<0.000000e+00> : vector<2x4xf32>
      %88 = vector.multi_reduction <add>, %87, %cst_39 [1] : vector<2x2x4xf32> to vector<2x4xf32>
      %c0_40 = arith.constant 0 : index
      %c0_41 = arith.constant 0 : index
      %89 = vector.load %arg6[%c0_40, %c0_41] : memref<2x4xf32, #tpu.memory_space<vmem>>, vector<2x4xf32>
      %90 = vector.shape_cast %27 : vector<2x2xf32> to vector<2x2x1xf32>
      %91 = vector.shape_cast %89 : vector<2x4xf32> to vector<1x2x4xf32>
      %92 = vector.broadcast %90 : vector<2x2x1xf32> to vector<2x2x4xf32>
      %93 = vector.broadcast %91 : vector<1x2x4xf32> to vector<2x2x4xf32>
      %94 = arith.mulf %92, %93 : vector<2x2x4xf32>
      %cst_42 = arith.constant dense<0.000000e+00> : vector<2x4xf32>
      %95 = vector.multi_reduction <add>, %94, %cst_42 [1] : vector<2x2x4xf32> to vector<2x4xf32>
      %96 = arith.addf %88, %95 : vector<2x4xf32>
      %cst_43 = arith.constant 9.99999974E-6 : f32
      %97 = vector.broadcast %cst_43 : f32 to vector<2x4xf32>
      %98 = arith.addf %96, %97 : vector<2x4xf32>
      %99 = math.rsqrt %98 : vector<2x4xf32>
      %c0_44 = arith.constant 0 : index
      %c0_45 = arith.constant 0 : index
      %100 = vector.load %arg7[%c0_44, %c0_45] : memref<1x4xf32, #tpu.memory_space<vmem>>, vector<1x4xf32>
      %c0_46 = arith.constant 0 : index
      %c0_47 = arith.constant 0 : index
      %101 = vector.load %arg8[%c0_46, %c0_47] : memref<1x4xf32, #tpu.memory_space<vmem>>, vector<1x4xf32>
      %102 = vector.broadcast %100 : vector<1x4xf32> to vector<2x4xf32>
      %103 = arith.mulf %102, %99 : vector<2x4xf32>
      %104 = arith.mulf %103, %103 : vector<2x4xf32>
      %105 = arith.mulf %60, %60 : vector<2x4xf32>
      %106 = arith.addf %23, %105 : vector<2x4xf32>
      %107 = arith.mulf %104, %106 : vector<2x4xf32>
      %cst_48 = arith.constant 2.000000e+00 : f32
      %108 = vector.broadcast %cst_48 : f32 to vector<2x4xf32>
      %109 = arith.mulf %108, %103 : vector<2x4xf32>
      %110 = vector.broadcast %101 : vector<1x4xf32> to vector<2x4xf32>
      %111 = arith.mulf %109, %110 : vector<2x4xf32>
      %112 = arith.mulf %111, %60 : vector<2x4xf32>
      %113 = arith.addf %107, %112 : vector<2x4xf32>
      %114 = arith.mulf %101, %101 : vector<1x4xf32>
      %115 = vector.broadcast %114 : vector<1x4xf32> to vector<2x4xf32>
      %116 = arith.addf %113, %115 : vector<2x4xf32>
      %cst_49 = arith.constant dense<0.000000e+00> : vector<2xf32>
      %117 = vector.multi_reduction <add>, %116, %cst_49 [1] : vector<2x4xf32> to vector<2xf32>
      %118 = vector.shape_cast %117 : vector<2xf32> to vector<2x1xf32>
      %cst_50 = arith.constant 2.500000e-01 : f32
      %119 = vector.broadcast %cst_50 : f32 to vector<2x1xf32>
      %120 = arith.mulf %118, %119 : vector<2x1xf32>
      %cst_51 = arith.constant 9.99999974E-6 : f32
      %121 = vector.broadcast %cst_51 : f32 to vector<2x1xf32>
      %122 = arith.addf %120, %121 : vector<2x1xf32>
      %123 = math.rsqrt %122 : vector<2x1xf32>
      %124 = vector.broadcast %123 : vector<2x1xf32> to vector<2x4xf32>
      %125 = arith.mulf %103, %124 : vector<2x4xf32>
      %c0_52 = arith.constant 0 : index
      %c0_53 = arith.constant 0 : index
      %126 = vector.load %arg20[%c0_52, %c0_53] : memref<2x4xf32, #tpu.memory_space<vmem>>, vector<2x4xf32>
      tpu.vector_store %arg20[%c0_52, %c0_53], %125 {strides = array<i32>} : memref<2x4xf32, #tpu.memory_space<vmem>>, vector<2x4xf32>,
      %127 = arith.mulf %103, %59 : vector<2x4xf32>
      %128 = vector.broadcast %101 : vector<1x4xf32> to vector<2x4xf32>
      %129 = arith.subf %128, %127 : vector<2x4xf32>
      %130 = vector.broadcast %123 : vector<2x1xf32> to vector<2x4xf32>
      %131 = arith.mulf %129, %130 : vector<2x4xf32>
      %c0_54 = arith.constant 0 : index
      %c0_55 = arith.constant 0 : index
      %132 = vector.load %arg21[%c0_54, %c0_55] : memref<2x4xf32, #tpu.memory_space<vmem>>, vector<2x4xf32>
      tpu.vector_store %arg21[%c0_54, %c0_55], %131 {strides = array<i32>} : memref<2x4xf32, #tpu.memory_space<vmem>>, vector<2x4xf32>,
      %c0_56 = arith.constant 0 : index
      %c0_57 = arith.constant 0 : index
      %133 = vector.load %arg14[%c0_56, %c0_57] : memref<2x4xf32, #tpu.memory_space<vmem>>, vector<2x4xf32>
      tpu.vector_store %arg14[%c0_56, %c0_57], %18 {strides = array<i32>} : memref<2x4xf32, #tpu.memory_space<vmem>>, vector<2x4xf32>,
      %c0_58 = arith.constant 0 : index
      %c0_59 = arith.constant 0 : index
      %134 = vector.load %arg15[%c0_58, %c0_59] : memref<2x4xf32, #tpu.memory_space<vmem>>, vector<2x4xf32>
      tpu.vector_store %arg15[%c0_58, %c0_59], %64 {strides = array<i32>} : memref<2x4xf32, #tpu.memory_space<vmem>>, vector<2x4xf32>,
      %c0_60 = arith.constant 0 : index
      %c0_61 = arith.constant 0 : index
      %135 = vector.load %arg16[%c0_60, %c0_61] : memref<2x4xf32, #tpu.memory_space<vmem>>, vector<2x4xf32>
      tpu.vector_store %arg16[%c0_60, %c0_61], %45 {strides = array<i32>} : memref<2x4xf32, #tpu.memory_space<vmem>>, vector<2x4xf32>,
      %c0_62 = arith.constant 0 : index
      %c0_63 = arith.constant 0 : index
      %136 = vector.load %arg17[%c0_62, %c0_63] : memref<2x4xf32, #tpu.memory_space<vmem>>, vector<2x4xf32>
      tpu.vector_store %arg17[%c0_62, %c0_63], %82 {strides = array<i32>} : memref<2x4xf32, #tpu.memory_space<vmem>>, vector<2x4xf32>,
    } else {
    }
    %c1_i32_6 = arith.constant 1 : i32
    %13 = arith.cmpi eq, %arg0, %c1_i32_6 : i32
    %14 = arith.extui %13 : i1 to i32
    %c0_i32_7 = arith.constant 0 : i32
    %15 = arith.cmpi ne, %14, %c0_i32_7 : i32
    scf.if %15 {
      %c0 = arith.constant 0 : index
      %c0_8 = arith.constant 0 : index
      %c0_9 = arith.constant 0 : index
      %16 = vector.load %arg2[%c0, %c0_8, %c0_9] : memref<2x4x128xf32, #tpu.memory_space<vmem>>, vector<2x4x128xf32>
      %c0_10 = arith.constant 0 : index
      %c0_11 = arith.constant 0 : index
      %17 = vector.load %arg20[%c0_10, %c0_11] : memref<2x4xf32, #tpu.memory_space<vmem>>, vector<2x4xf32>
      %18 = vector.shape_cast %17 : vector<2x4xf32> to vector<2x4x1xf32>
      %19 = vector.broadcast %18 : vector<2x4x1xf32> to vector<2x4x128xf32>
      %20 = arith.mulf %16, %19 : vector<2x4x128xf32>
      %c0_12 = arith.constant 0 : index
      %c0_13 = arith.constant 0 : index
      %21 = vector.load %arg21[%c0_12, %c0_13] : memref<2x4xf32, #tpu.memory_space<vmem>>, vector<2x4xf32>
      %22 = vector.shape_cast %21 : vector<2x4xf32> to vector<2x4x1xf32>
      %23 = vector.broadcast %22 : vector<2x4x1xf32> to vector<2x4x128xf32>
      %24 = arith.addf %20, %23 : vector<2x4x128xf32>
      %c0_14 = arith.constant 0 : index
      %c0_15 = arith.constant 0 : index
      %c0_16 = arith.constant 0 : index
      %25 = vector.load %arg13[%c0_14, %c0_15, %c0_16] : memref<2x4x128xf32, #tpu.memory_space<vmem>>, vector<2x4x128xf32>
      tpu.vector_store %arg13[%c0_14, %c0_15, %c0_16], %24 {strides = array<i32>} : memref<2x4x128xf32, #tpu.memory_space<vmem>>, vector<2x4x128xf32>,
    } else {
    }
    return
  }
  func.func @transform_0(%arg0: i32, %arg1: i32) -> (i32, i32, i32) {
    %c0_i32 = arith.constant 0 : i32
    %c0_i32_0 = arith.constant 0 : i32
    %c0_i32_1 = arith.constant 0 : i32
    return %c0_i32, %c0_i32_0, %arg1 : i32, i32, i32
  }
  func.func @transform_1(%arg0: i32, %arg1: i32) -> (i32, i32) {
    %c0_i32 = arith.constant 0 : i32
    %c0_i32_0 = arith.constant 0 : i32
    %c0_i32_1 = arith.constant 0 : i32
    return %c0_i32, %c0_i32_0 : i32, i32
  }
  func.func @transform_2(%arg0: i32, %arg1: i32) -> (i32, i32) {
    %c0_i32 = arith.constant 0 : i32
    %c0_i32_0 = arith.constant 0 : i32
    %c0_i32_1 = arith.constant 0 : i32
    return %c0_i32, %c0_i32_0 : i32, i32
  }
  func.func @transform_3(%arg0: i32, %arg1: i32) -> (i32, i32) {
    %c0_i32 = arith.constant 0 : i32
    %c0_i32_0 = arith.constant 0 : i32
    %c0_i32_1 = arith.constant 0 : i32
    return %c0_i32, %c0_i32_0 : i32, i32
  }
  func.func @transform_4(%arg0: i32, %arg1: i32) -> (i32, i32) {
    %c0_i32 = arith.constant 0 : i32
    %c0_i32_0 = arith.constant 0 : i32
    %c0_i32_1 = arith.constant 0 : i32
    return %c0_i32, %c0_i32_0 : i32, i32
  }
  func.func @transform_5(%arg0: i32, %arg1: i32) -> (i32, i32) {
    %c0_i32 = arith.constant 0 : i32
    %c0_i32_0 = arith.constant 0 : i32
    %c0_i32_1 = arith.constant 0 : i32
    return %c0_i32, %c0_i32_0 : i32, i32
  }
  func.func @transform_6(%arg0: i32, %arg1: i32) -> (i32, i32) {
    %c0_i32 = arith.constant 0 : i32
    %c0_i32_0 = arith.constant 0 : i32
    %c0_i32_1 = arith.constant 0 : i32
    return %c0_i32, %c0_i32_0 : i32, i32
  }
  func.func @transform_7(%arg0: i32, %arg1: i32) -> (i32, i32) {
    %c0_i32 = arith.constant 0 : i32
    %c0_i32_0 = arith.constant 0 : i32
    %c0_i32_1 = arith.constant 0 : i32
    return %c0_i32, %c0_i32_0 : i32, i32
  }
  func.func @transform_8(%arg0: i32, %arg1: i32) -> (i32, i32) {
    %c0_i32 = arith.constant 0 : i32
    %c0_i32_0 = arith.constant 0 : i32
    %c0_i32_1 = arith.constant 0 : i32
    return %c0_i32, %c0_i32_0 : i32, i32
  }
  func.func @transform_9(%arg0: i32, %arg1: i32) -> (i32, i32) {
    %c0_i32 = arith.constant 0 : i32
    %c0_i32_0 = arith.constant 0 : i32
    %c0_i32_1 = arith.constant 0 : i32
    return %c0_i32, %c0_i32_0 : i32, i32
  }
  func.func @transform_10(%arg0: i32, %arg1: i32) -> (i32, i32) {
    %c0_i32 = arith.constant 0 : i32
    %c0_i32_0 = arith.constant 0 : i32
    %c0_i32_1 = arith.constant 0 : i32
    return %c0_i32, %c0_i32_0 : i32, i32
  }
  func.func @transform_11(%arg0: i32, %arg1: i32) -> (i32, i32, i32) {
    %0 = arith.muli %arg0, %arg1 : i32
    %c0_i32 = arith.constant 0 : i32
    %c0_i32_0 = arith.constant 0 : i32
    %c0_i32_1 = arith.constant 0 : i32
    return %c0_i32, %c0_i32_0, %0 : i32, i32, i32
  }
  func.func @transform_12(%arg0: i32, %arg1: i32) -> (i32, i32) {
    %c0_i32 = arith.constant 0 : i32
    %c0_i32_0 = arith.constant 0 : i32
    %c0_i32_1 = arith.constant 0 : i32
    return %c0_i32, %c0_i32_0 : i32, i32
  }
  func.func @transform_13(%arg0: i32, %arg1: i32) -> (i32, i32) {
    %c0_i32 = arith.constant 0 : i32
    %c0_i32_0 = arith.constant 0 : i32
    %c0_i32_1 = arith.constant 0 : i32
    return %c0_i32, %c0_i32_0 : i32, i32
  }
  func.func @transform_14(%arg0: i32, %arg1: i32) -> (i32, i32) {
    %c0_i32 = arith.constant 0 : i32
    %c0_i32_0 = arith.constant 0 : i32
    %c0_i32_1 = arith.constant 0 : i32
    return %c0_i32, %c0_i32_0 : i32, i32
  }
  func.func @transform_15(%arg0: i32, %arg1: i32) -> (i32, i32) {
    %c0_i32 = arith.constant 0 : i32
    %c0_i32_0 = arith.constant 0 : i32
    %c0_i32_1 = arith.constant 0 : i32
    return %c0_i32, %c0_i32_0 : i32, i32
  }
}

</mosaic_0001>

<bundles_post_ra>
// kernel: tpu_custom_call.1
= control target key start
LH: loop header
LB: loop body
LE: loop exit
PB: predicated region body
PF: predicated region fallthrough
CT: control target
= control target key end

     0   :  { %s2236_s0 = inlined_call_operand.hbm [shape: f32[2,4,256], index: 0, kind: input, shape index: {}]   ;;  %s2237_s1 = inlined_call_operand.hbm [shape: f32[2,4], index: 1, kind: input, shape index: {}]   ;;  %s2238_s2 = inlined_call_operand.vmem [shape: f32[2,4], index: 2, kind: input, shape index: {}]   ;;  %s2239_s3 = inlined_call_operand.vmem [shape: f32[2,4], index: 3, kind: input, shape index: {}]   ;;  %s2240_s4 = inlined_call_operand.vmem [shape: f32[2,4], index: 4, kind: input, shape index: {}]   ;;  %s2241_s5 = inlined_call_operand.hbm [shape: f32[1,4], index: 5, kind: input, shape index: {}]   ;;  %s2242_s6 = inlined_call_operand.hbm [shape: f32[1,4], index: 6, kind: input, shape index: {}]   ;;  %s2243_s7 = inlined_call_operand.vmem [shape: f32[2,2], index: 7, kind: input, shape index: {}]   ;;  %s2244_s8 = inlined_call_operand.vmem [shape: f32[2,2], index: 8, kind: input, shape index: {}]   ;;  %s2245_s9 = inlined_call_operand.vmem [shape: f32[2,2], index: 9, kind: input, shape index: {}]   ;;  %s2246_s10 = inlined_call_operand.vmem [shape: f32[2,2], index: 10, kind: input, shape index: {}]   ;;  %s2247_s11 = inlined_call_operand.hbm [shape: f32[2,4,256], index: 11, kind: output, shape index: {0}]   ;;  %s2248_s12 = inlined_call_operand.hbm [shape: f32[2,4], index: 12, kind: output, shape index: {1}]   ;;  %s2249_s13 = inlined_call_operand.hbm [shape: f32[2,4], index: 13, kind: output, shape index: {2}]   ;;  %s2250_s14 = inlined_call_operand.hbm [shape: f32[2,4], index: 14, kind: output, shape index: {3}]   ;;  %s2251_s15 = inlined_call_operand.hbm [shape: f32[2,4], index: 15, kind: output, shape index: {4}]  }
   0x1   :  { %2270 = sst [smem:[#allocation34_spill]] %s2237_s1 }
   0x2   :  { %2271 = sst [smem:[#allocation35_spill]] %s2238_s2 }
   0x3   :  { %2272 = sst [smem:[#allocation36_spill]] %s2239_s3 }
   0x4   :  { %2273 = sst [smem:[#allocation37_spill]] %s2240_s4 }
   0x5   :  { %2274 = sst [smem:[#allocation38_spill]] %s2241_s5 }
   0x6   :  { %2275 = sst [smem:[#allocation39_spill]] %s2242_s6 }
   0x7   :  { %2276 = sst [smem:[#allocation40_spill]] %s2245_s9 }
   0x8   :  { %2277 = sst [smem:[#allocation41_spill]] %s2246_s10 }
   0x9   :  { %2278 = sst [smem:[#allocation42_spill]] %s2247_s11 }
   0xa   :  { %2279 = sst [smem:[#allocation43_spill]] %s2248_s12 }
   0xb   :  { %2280 = sst [smem:[#allocation44_spill]] %s2249_s13 }
   0xc   :  { %2281 = sst [smem:[#allocation45_spill]] %s2250_s14 }
   0xd   :  { %2282 = sst [smem:[#allocation46_spill]] %s2251_s15 }
   0xe   :  { %21 = vsyncpa [#allocation7], 0 }
   0xf   :  { %23 = vsyncpa [#allocation7 + $0x1], 0 }
  0x10   :  { %24 = vsyncpa [#allocation10], 0 }
  0x11   :  { %25 = vsyncpa [#allocation13], 0 }
  0x12   :  { %26 = vsyncpa [#allocation8], 0 }
  0x13   :  { %28 = vsyncpa [#allocation8 + $0x1], 0 }
  0x14   :  { %29 = vsyncpa [#allocation16], 0 }
  0x15   :  { %30 = vsyncpa [#allocation19], 0  ;;  %s1807_s18 = smov 0   ;;  %s1809_s19 = smov 0  }
  0x16   :  { %s1811_s20 = smov 0   ;;  %s1813_s21 = smov 0  }
  0x17   :  { %s1815_s22 = smov 0   ;;  %s1817_s23 = smov 0  }
  0x18   :  { %s1819_s24 = smov 0   ;;  %s1821_s25 = smov 0  }
  0x19   :  { %s1823_s26 = smov 0   ;;  %s1825_s27 = smov 0  }
  0x1a   :  { %s1827_s28 = smov 0  }
  0x1b LB: > { %2283 = sst [smem:[#allocation27_spill]] %s1669_s18  ;;  %s1167_s29 = sadd.s32 4294967295, %s1709_s28   ;;  %s1709_s28 = sphi %s1827_s28, %s36_s28   ;;  %s1705_s27 = sphi %s1825_s27, %s2334_s27   ;;  %s1701_s26 = sphi %s1823_s26, %s2333_s26   ;;  %s1697_s25 = sphi %s1821_s25, %s2326_s25   ;;  %s1693_s24 = sphi %s1819_s24, %s2325_s24   ;;  %s1689_s23 = sphi %s1817_s23, %s2332_s23   ;;  %s1685_s22 = sphi %s1815_s22, %s2331_s22   ;;  %s1681_s21 = sphi %s1813_s21, %s2330_s21   ;;  %s1677_s20 = sphi %s1811_s20, %s2329_s20   ;;  %s1673_s19 = sphi %s1809_s19, %s2328_s19   ;;  %s1669_s18 = sphi %s1807_s18, %s2327_s18  }
  0x1c   : > { %2284 = sst [smem:[#allocation28_spill]] %s1701_s26  ;;  %s1168_s30 = sadd.s32 4294967294, %s1709_s28  }
  0x1d   : > { %2285 = sst [smem:[#allocation29_spill]] %s1705_s27  ;;  %p62_p0 = scmp.ne.s32.totalorder %s1689_s23, %s1685_s22 }
  0x1e   : > { %2286 = sst [smem:[#allocation30_spill]] %s1709_s28  ;;  %p63_p1 = scmp.eq.s32.totalorder %s1709_s28, 0 }
  0x1f   : > { %p68_p2 = scmp.ne.s32.totalorder %s1685_s22, %s1681_s21  ;;  %p1867_p3 = scmp.eq.s32.totalorder %s1167_s29, 0 }
  0x20   : > { %p1872_p4 = por %p63_p1, %p62_p0  ;;  %p303_p5 = scmp.ne.s32.totalorder %s1677_s20, %s1673_s19 }
  0x21   : > { %s2287_s17 = scalar_select %p1867_p3, 1, 0 }
  0x22   : > { %p1880_p6 = por %p1867_p3, %p68_p2  ;;  %p1884_p7 = scmp.eq.s32.totalorder %s1167_s29, 3 }
  0x23   : > { %p309_p8 = scmp.ne.s32.totalorder %s1673_s19, %s1669_s18  ;;  %p310_p9 = scmp.eq.s32.totalorder %s1168_s30, 3 }
  0x24   : > { %s2289_s16 = scalar_select %p1880_p6, 1, 0 }
  0x25   : > { %s2290_s21 = scalar_select %p1884_p7, 1, 0 }
  0x26   : > { %p1892_p10 = por %p1884_p7, %p303_p5  ;;  %p1169_p11 = scmp.ge.s32.totalorder %s1709_s28, 1 }
  0x27   : > { %2291 = sst [smem:[#allocation31_spill]] %s2290_s21  ;;  %p1897_p12 = por %p310_p9, %p309_p8 }
  0x28   : > { %s2292_s15 = scalar_select %p1892_p10, 1, 0 }
  0x29   : > { %s2294_s11 = scalar_select %p1897_p12, 1, 0 }
  0x2a   : > { %2293 = sst [smem:[#allocation32_spill]] %s2292_s15  ;;  %p401_p13 = scmp.lt.s32.totalorder %s1709_s28, 5 }
  0x2b   : > { %2295 = sst [smem:[#allocation33_spill]] %s2294_s11  ;;  %s1711_s29 = smov [#allocation9]  }
  0x2c   : > { %p1902_p0 = pnand %p1169_p11, %p401_p13  ;;  %s414_s12 = sshll.u32 %s1711_s29, 4  ;;  %s415_s12 = int_to_ptr.vmem [resolvable:$true] %s414_s12 }
  0x2d   : > { %p1250_p2 = scmp.lt.s32.totalorder %s1709_s28, 4  ;;  %s1712_s18 = smov [#allocation11]  }
  0x2e   : > { %s2296_s14 = scalar_select %p1902_p0, 1, 0 }
  0x2f   : > { %p1229_p1 = pneg %p1902_p0  ;;  %p1917_p8 = pnand %p1250_p2, %p1872_p4 }
  0x30   : > { %s434_s15 = sshll.u32 %s1712_s18, 4  ;;  %s1713_s21 = smov [#allocation12]   ;;  %s435_s15 = int_to_ptr.vmem [resolvable:$true] %s434_s15 }
  0x31   : > { %p1911_p5 = pnand %p1229_p1, %p1867_p3  ;;  %s445_s29 = sshll.u32 %s1713_s21, 4  ;;  %s446_s29 = int_to_ptr.vmem [resolvable:$true] %s445_s29 }
  0x32   : > { %s1382_s4 = scalar_lea.vmem %s415_s12, 32  ;;  %p1390_p12 = scmp.lt.s32.totalorder %s415_s12, %s415_s12 }
  0x33   : > { %p1373_p9 = pneg %p1911_p5  ;;  %p1383_p11 = scmp.ne.s32.totalorder %s415_s12, %s1382_s4 }
  0x34   : > { %p1391_p10 = scmp.lt.s32.totalorder %s1382_s4, %s1382_s4 }
  0x35   : > { %p1385_p13 = pnand %p1383_p11, %p1373_p9 }
  0x36   : > { %p1392_p7 = por %p1391_p10, %p1390_p12 }
  0x37   : > { %p1386_p1 = pneg %p1385_p13 }
  0x39   : > { %p1393_p3 = pnand %p1392_p7, %p1386_p1 }
  0x3b   : > { %1396 = shalt.err (!%p1393_p3)
}
  0x3c   : > { %s2299_s1 = sld [smem:[#allocation34_spill]]  ;;  %s1408_s18 = scalar_lea.vmem %s435_s15, 16 }
  0x3d   : > { %p1409_p4 = scmp.ne.s32.totalorder %s435_s15, %s1408_s18  ;;  %s1415_s21 = scalar_lea.vmem %s435_s15, 32 }
  0x3e   : > { %p1416_p13 = scmp.lt.s32.totalorder %s435_s15, %s435_s15  ;;  %p1417_p10 = scmp.lt.s32.totalorder %s1415_s21, %s1408_s18 }
  0x3f   : > { %p1411_p2 = pnand %p1409_p4, %p1373_p9 }
  0x40   : > { %p1418_p7 = por %p1417_p10, %p1416_p13 }
  0x41   : > { %p1412_p11 = pneg %p1411_p2 }
  0x42   : > { %1232 = dma.hbm_to_vmem [thread:$0]  (!%p1911_p5), %s2299_s1, 32, %s415_s12, [#allocation10]  }
  0x43   : > { %p1419_p3 = pnand %p1418_p7, %p1412_p11 }
  0x45   : > { %1422 = shalt.err (!%p1419_p3)
}
  0x46   : > { %s2300_s5 = sld [smem:[#allocation38_spill]]  ;;  %s1434_s12 = scalar_lea.vmem %s446_s29, 16 }
  0x47   : > { %p1435_p12 = scmp.ne.s32.totalorder %s446_s29, %s1434_s12  ;;  %s1441_s13 = scalar_lea.vmem %s446_s29, 32 }
  0x48   : > { %p1442_p2 = scmp.lt.s32.totalorder %s446_s29, %s446_s29  ;;  %p1443_p6 = scmp.lt.s32.totalorder %s1441_s13, %s1434_s12 }
  0x49   : > { %p1437_p1 = pnand %p1435_p12, %p1373_p9 }
  0x4a   : > { %p1444_p0 = por %p1443_p6, %p1442_p2 }
  0x4b   : > { %p1438_p4 = pneg %p1437_p1 }
  0x4c   : > { %1235 = dma.hbm_to_vmem [thread:$0]  (!%p1911_p5), %s2300_s5, 16, %s435_s15, [#allocation10]  }
  0x4d   : > { %p1445_p13 = pnand %p1444_p0, %p1438_p4 }
  0x4f   : > { %1448 = shalt.err (!%p1445_p13)
}
  0x50   : > { %s2301_s6 = sld [smem:[#allocation39_spill]]  ;;  %s45_s15 = sadd.s32 1, %s1701_s26 }
  0x51   : > { %s48_s4 = sadd.s32 1, %s1705_s27  ;;  %p46_p6 = scmp.ge.s32.totalorder %s45_s15, 2 }
  0x52   : > { %s288_s28 = smul.u32 %s1701_s26, %s1705_s27  ;;  %s468_s12 = sand.u32 1, %s1689_s23  }
  0x53   : > { %s1175_s30 = sshll.u32 %s1701_s26, 6  ;;  %s2336_s15 = smov (%p46_p6, %s45_s15), 0 }
  0x54   : > { %s2338_s4 = smov (!%p46_p6, %s48_s4), %s1705_s27  ;;  %s52_s13 = ssub.s32 %s1701_s26, %s2336_s15 }
  0x55   : > { %p50_p0 = scmp.ge.s32.totalorder %s2338_s4, 2  ;;  %p53_p9 = scmp.eq.s32.totalorder %s52_s13, 0 }
  0x56   : > { %1238 = dma.hbm_to_vmem [thread:$0]  (!%p1911_p5), %s2301_s6, 16, %s446_s29, [#allocation13]  }
  0x57   : > { %s1174_s18 = sshll.u32 %s468_s12, 3  ;;  %s1961_s1 = scalar_lea.hbm %s2236_s0, %s1175_s30 }
  0x58   : > { %s2340_s4 = smov (%p50_p0, %s2338_s4), 0  ;;  %s2302_s5 = sadd.s32 1, %s1689_s23 }
  0x59   : > { %s1968_s6 = scalar_select %p53_p9, %s1689_s23, %s2302_s5  }
  0x5a   : > { %s289_s2 = smul.u32 %s2340_s4, %s2336_s15  ;;  %s472_s3 = scalar_lea.vmem [#allocation6], %s1174_s18 }
  0x5b   : > { %s478_s10 = sshll.u32 %s472_s3, 4  ;;  %s2303_s26 = sadd.s32 1, %s1677_s20  ;;  %s479_s10 = int_to_ptr.vmem [resolvable:$true] %s478_s10 }
  0x5c   : > { %s290_s27 = ssub.s32 %s288_s28, %s289_s2  ;;  %s469_s9 = scalar_lea.sflag [#allocation7], %s468_s12 }
  0x5d   : > { %p291_p5 = scmp.eq.s32.totalorder %s290_s27, 0  ;;  %p1451_p11 = pneg %p1917_p8 }
  0x5e   : > { %s1462_s30 = scalar_lea.vmem %s479_s10, 128  ;;  %s1714_s21 = smov [#allocation6]  }
  0x5f   : > { %s1975_s13 = scalar_select %p291_p5, %s1677_s20, %s2303_s26  }
  0x60   : > { %p1463_p10 = scmp.ne.s32.totalorder %s479_s10, %s1462_s30  ;;  %s1467_s29 = sshll.u32 %s1714_s21, 4  ;;  %s1468_s29 = int_to_ptr.vmem [resolvable:$false] %s1467_s29 }
  0x61   : > { %s1469_s5 = scalar_lea.vmem %s1468_s29, 256  ;;  %p1470_p12 = scmp.lt.s32.totalorder %s479_s10, %s1468_s29 }
  0x62   : > { %p1465_p7 = pnand %p1463_p10, %p1451_p11  ;;  %p1471_p1 = scmp.lt.s32.totalorder %s1469_s5, %s1462_s30 }
  0x64   : > { %p1466_p3 = pneg %p1465_p7  ;;  %p1472_p4 = por %p1471_p1, %p1470_p12 }
  0x66   : > { %p1473_p2 = pnand %p1472_p4, %p1466_p3 }
  0x68   : > { %1476 = shalt.err (!%p1473_p2)
}
  0x69   : > { %s1715_s2 = smov 128   ;;  %s1716_s3 = smov 64  }
  0x6a   : > { %s1717_s26 = smov 4   ;;  %p2304_p13 = scmp.ne.s32.totalorder %s2296_s14, 0 }
  0x6b   : > { %1242 = dma.hbm_to_vmem [thread:$0]  (!%p1917_p8), %s1961_s1, 128, %s479_s10, %s469_s9, %s1715_s2, %s1716_s3, %s1717_s26  }
  0x6c   : > { %490 = sbr.rel (%p2304_p13) target bundleno = 922 (0x39a), region = 64  ;;  %s492_s27 = sand.u32 (!%p2304_p13), 1, %s1685_s22  }
  0x6d   : > { %s1177_s28 = sshll.u32 (!%p2304_p13), %s492_s27, 3  ;;  %s493_s12 = scalar_lea.sflag (!%p2304_p13), [#allocation7], %s492_s27 }
  0x6e   : > { %s1985_s18 = scalar_lea.vmem (!%p2304_p13), [#allocation6], %s1177_s28  ;;  %p2305_p6 = scmp.ne.s32.totalorder (!%p2304_p13), %s2289_s16, 0 }
  0x71   : > { %1644 = dma.done.wait (%p2305_p6), %s493_s12, 128  }
  0x72   : > { %1646 = vsyncadd (%p2305_p6), %s493_s12, 4294967168  ;;  %p2306_p0 = scmp.ne.s32.totalorder %s2287_s17, 0 }
  0x74   : > { %1648 = dma.done.wait (%p2306_p0), [#allocation10], 48  }
  0x75   : > { %1650 = vsyncadd (%p2306_p0), [#allocation10], 4294967248 }
  0x76   : > { %1652 = dma.done.wait (%p2306_p0), [#allocation13], 16  }
  0x77   : > { %1654 = vsyncadd (%p2306_p0), [#allocation13], 4294967280  ;;  %s544_s1 = sand.u32 1, %s1673_s19   ;;  %p556_p8 = scmp.eq.s32.totalorder %s1697_s25, 0 }
  0x78   : > { %s1181_s9 = sshll.u32 %s544_s1, 3  ;;  %p557_p9 = scmp.eq.s32.totalorder %s1693_s24, 0 }
  0x79   : > { %s2006_s10 = scalar_lea.vmem [#allocation14], %s1181_s9 }
  0x7a   : > { %p558_p5 = pnand %p557_p9, %p556_p8 }
  0x7c   : > { %561 = sbr.rel (%p558_p5) target bundleno = 131 (0x83), region = 84 }
  0x81   : > { %vm562_vm0 = vcmask 25600   ;;  %v1718_v0 = vmov 0.0  }
  0x82   : > { %563 = vst.msk [vmem:[#allocation2] sm:$0x3] %vm562_vm0, %v1718_v0  ;;  %564 = vst.msk [vmem:[#allocation3] sm:$0x3] %vm562_vm0, %v1718_v0 }
  0x83 PF: > { %p1182_p11 = scmp.ne.s32.totalorder %s1697_s25, 0 }
  0x85   : > { %567 = sbr.rel (%p1182_p11) target bundleno = 290 (0x122), region = 88 }
  0x8a   : > { %v568_v1 = vld [vmem:[%s1985_s18] sm:$0xf]  ;;  %vm571_vm1 = vcmask 1043456   ;;  %v569_v2 = vld [vmem:[%s1985_s18 + $0x4] sm:$0xf]  ;;  %v580_v9 = vlaneseq  ;;  %vm590_vm2 = vcmask 1041409  }
  0x8b   : > { %v572_v3 = vsel %vm571_vm1, %v568_v1, 0.0  ;;  %v597_v4 = vmul.f32 %v568_v1, %v568_v1  ;;  %v598_v5 = vmul.f32 %v569_v2, %v569_v2  ;;  %v575_v7 = vsel %vm571_vm1, %v569_v2, 0.0  ;;  %v570_v17 = vld [vmem:[#allocation2] sm:$0x3]  ;;  %v596_v22 = vld [vmem:[#allocation3] sm:$0x3] }
  0x8c   : > { %573 = vadd.xlane.f32.xlu0 %v572_v3  ;;  %v581_v10 = vand.u32 127, %v580_v9  ;;  %v583_v11 = vshrl.u32 %v580_v9, 7  ;;  %vm594_vm3 = vcmask 25600  }
  0x8d   : > { %v599_v6 = vsel %vm571_vm1, %v597_v4, 0.0  ;;  %v602_v8 = vsel %vm571_vm1, %v598_v5, 0.0 }
  0x8e   : > { %600 = vadd.xlane.f32.xlu1 %v599_v6  ;;  %v584_v13 = vsub.s32 %v581_v10, %v583_v11 }
  0x90   : > { %576 = vadd.xlane.f32.xlu0 %v575_v7 }
  0x92   : > { %603 = vadd.xlane.f32.xlu1 %v602_v8 }
 0x115   : > { %v574_v12 = vpop.xlane.xlu0 %573 }
 0x116   : > { %v585_v16 = vrot.slane %v574_v12, %v584_v13 }
 0x117   : > { %v601_v14 = vpop.xlane.xlu1 %600 }
 0x118   : > { %v610_v20 = vrot.slane %v601_v14, %v584_v13 }
 0x119   : > { %v577_v15 = vpop.xlane.xlu0 %576 }
 0x11a   : > { %v589_v18 = vrot.slane %v577_v15, %v584_v13 }
 0x11b   : > { %v604_v19 = vpop.xlane.xlu1 %603 }
 0x11c   : > { %v591_v21 = vsel %vm590_vm2, %v589_v18, %v585_v16  ;;  %v614_v23 = vrot.slane %v604_v19, %v584_v13 }
 0x11d   : > { %v593_v24 = vadd.f32 %v591_v21, %v570_v17 }
 0x11e   : > { %v615_v25 = vsel %vm590_vm2, %v614_v23, %v610_v20 }
 0x11f   : > { %595 = vst.msk [vmem:[#allocation2] sm:$0x3] %vm594_vm3, %v593_v24  ;;  %v617_v26 = vadd.f32 %v615_v25, %v596_v22 }
 0x121   : > { %618 = vst.msk [vmem:[#allocation3] sm:$0x3] %vm594_vm3, %v617_v26 }
 0x122 PF: > { %p619_p10 = scmp.eq.s32.totalorder %s1697_s25, 1 }
 0x124   : > { %p620_p7 = pnand %p619_p10, %p557_p9 }
 0x125   : > { %s2307_s29 = sld [smem:[#allocation40_spill]] (!%p620_p7) }
 0x126   : > { %623 = sbr.rel (%p620_p7) target bundleno = 697 (0x2b9), region = 92  ;;  %s2308_s3 = sld [smem:[#allocation41_spill]] (!%p620_p7) }
 0x127   : > { %s2309_s28 = sld [smem:[#allocation36_spill]] (!%p620_p7) }
 0x128   : > { %s2310_s11 = sld [smem:[#allocation35_spill]] (!%p620_p7) }
 0x129   : > { %s2311_s17 = sld [smem:[#allocation37_spill]] (!%p620_p7) }
 0x12b   : > { %v637_v27 = vlaneseq  ;;  %v624_v28 = vld [vmem:[#allocation2] sm:$0x3]  ;;  %vm653_vm4 = vcmask 25600   ;;  %v636_v45 = vld [vmem:[#allocation9] sm:$0x3]  ;;  %vm670_vm5 = vcmask 1041409  }
 0x12c   : > { %v2014_v30 = vmul.f32 0.00390625, %v624_v28  ;;  %v631_v31 = vld [vmem:[%s2244_s8] sm:$0x3] }
 0x12d   : > { %v638_v29 = vshrl.u32 %v637_v27, 7  ;;  %v630_v32 = vld [vmem:[%s2243_s7] sm:$0x3] }
 0x12e   : > { %909 = vst.msk [vmem:[#allocation15] sm:$0x3] %vm653_vm4, %v2014_v30  ;;  %v632_v39 = vld [vmem:[%s2307_s29] sm:$0x3] }
 0x12f   : > { %v2022_v33 = vsub.s32 0, %v638_v29  ;;  %v646_v34 = vsub.s32 1, %v638_v29  ;;  %v633_v42 = vld [vmem:[%s2308_s3] sm:$0x3] }
 0x130   : > { %v634_v6 = vld [vmem:[%s2309_s28] sm:$0x3] }
 0x131   : > { %v677_v35 = vrot.slane %v631_v31, %v2022_v33  ;;  %v640_v36 = vrot.slane %v630_v32, %v2022_v33  ;;  %v684_v37 = vrot.slane %v631_v31, %v646_v34  ;;  %v647_v38 = vrot.slane %v630_v32, %v646_v34 }
 0x132   : > { %v719_v40 = vrot.slane %v632_v39, %v646_v34  ;;  %v712_v41 = vrot.slane %v632_v39, %v2022_v33  ;;  %v749_v43 = vrot.slane %v633_v42, %v646_v34  ;;  %v742_v44 = vrot.slane %v633_v42, %v2022_v33 }
 0x133   : > { %679 = vbcast.lane.b32.xlu1 %v677_v35, 256  ;;  %642 = vbcast.lane.b32.xlu0 %v640_v36, 256  ;;  %v635_v23 = vmul.f32 0.998001, %v634_v6 }
 0x137   : > { %686 = vbcast.lane.b32.xlu1 %v684_v37, 256  ;;  %649 = vbcast.lane.b32.xlu0 %v647_v38, 256 }
 0x13b   : > { %721 = vbcast.lane.b32.xlu1 %v719_v40, 256  ;;  %714 = vbcast.lane.b32.xlu0 %v712_v41, 256 }
 0x13f   : > { %751 = vbcast.lane.b32.xlu1 %v749_v43, 256  ;;  %744 = vbcast.lane.b32.xlu0 %v742_v44, 256  ;;  %v781_v44 = vld [vmem:[%s2310_s11] sm:$0x3] }
 0x1a5   : > { %v2036_v46 = vpop.permute.xlu1 %679  ;;  %v2038_v47 = vpop.permute.xlu0 %642 }
 0x1a6   : > { %v688_v48 = vmul.f32 %v2036_v46, %v2014_v30  ;;  %v651_v49 = vmul.f32 %v2038_v47, %v636_v45 }
 0x1a8   : > { %v690_v50 = vsel %vm653_vm4, %v688_v48, 0.0  ;;  %v654_v51 = vsel %vm653_vm4, %v651_v49, 0.0 }
 0x1a9   : > { %v691_v52 = vrot.slane %v690_v50, 4  ;;  %v655_v53 = vrot.slane %v654_v51, 4  ;;  %v2045_v54 = vpop.permute.xlu1 %686  ;;  %v650_v55 = vpop.permute.xlu0 %649 }
 0x1aa   : > { %v689_v56 = vmul.f32 %v2045_v54, %v2014_v30  ;;  %v652_v57 = vmul.f32 %v650_v55, %v636_v45  ;;  %v783_v49 = vmul.f32 %v781_v44, %v650_v55 }
 0x1ab   : > { %v692_v58 = vadd.f32 %v691_v52, %v690_v50  ;;  %v656_v59 = vadd.f32 %v655_v53, %v654_v51 }
 0x1ac   : > { %v697_v60 = vsel %vm653_vm4, %v689_v56, 0.0  ;;  %v661_v61 = vsel %vm653_vm4, %v652_v57, 0.0 }
 0x1ad   : > { %v657_v62 = vrot.slane %v656_v59, 2  ;;  %v698_v63 = vrot.slane %v697_v60, 4  ;;  %v2051_v0 = vpop.permute.xlu1 %721  ;;  %v2053_v1 = vpop.permute.xlu0 %714  ;;  %v693_v2 = vrot.slane %v692_v58, 2  ;;  %v662_v3 = vrot.slane %v661_v61, 4 }
 0x1af   : > { %v658_v4 = vadd.f32 %v657_v62, %v656_v59  ;;  %v699_v5 = vadd.f32 %v698_v63, %v697_v60  ;;  %v663_v7 = vadd.f32 %v662_v3, %v661_v61  ;;  %v694_v10 = vadd.f32 %v693_v2, %v692_v58 }
 0x1b0   : > { %v782_v58 = vmul.f32 %v781_v44, %v2038_v47  ;;  %v791_v59 = vsel %vm653_vm4, %v783_v49, 0.0 }
 0x1b1   : > { %v700_v8 = vrot.slane %v699_v5, 2  ;;  %v2058_v9 = vpop.permute.xlu1 %751  ;;  %v664_v11 = vrot.slane %v663_v7, 2  ;;  %v2061_v13 = vpop.permute.xlu0 %744  ;;  %v659_v14 = vrot.slane %v658_v4, 1  ;;  %v695_v20 = vrot.slane %v694_v10, 1 }
 0x1b2   : > { %v754_v12 = vmul.f32 %v2058_v9, %v634_v6  ;;  %v753_v19 = vmul.f32 %v2061_v13, %v634_v6 }
 0x1b3   : > { %v701_v15 = vadd.f32 %v700_v8, %v699_v5  ;;  %v665_v16 = vadd.f32 %v664_v11, %v663_v7  ;;  %v660_v22 = vadd.f32 %v659_v14, %v658_v4  ;;  %v696_v29 = vadd.f32 %v695_v20, %v694_v10  ;;  %v626_v14 = vld [vmem:[#allocation3] sm:$0x3] }
 0x1b4   : > { %v762_v18 = vsel %vm653_vm4, %v754_v12, 0.0  ;;  %v755_v24 = vsel %vm653_vm4, %v753_v19, 0.0  ;;  %v784_v4 = vsel %vm653_vm4, %v782_v58, 0.0  ;;  %v792_v5 = vrot.slane %v791_v59, 4 }
 0x1b5   : > { %v702_v17 = vrot.slane %v701_v15, 1  ;;  %v666_v21 = vrot.slane %v665_v16, 1  ;;  %v763_v27 = vrot.slane %v762_v18, 4  ;;  %v756_v28 = vrot.slane %v755_v24, 4 }
 0x1b6   : > { %v785_v10 = vrot.slane %v784_v4, 4  ;;  %v793_v47 = vadd.f32 %v792_v5, %v791_v59 }
 0x1b7   : > { %v703_v25 = vadd.f32 %v702_v17, %v701_v15  ;;  %v667_v26 = vadd.f32 %v666_v21, %v665_v16  ;;  %v764_v35 = vadd.f32 %v763_v27, %v762_v18  ;;  %v757_v36 = vadd.f32 %v756_v28, %v755_v24  ;;  %v779_v27 = vld [vmem:[%s2311_s17] sm:$0x3] }
 0x1b8   : > { %v627_v16 = vmul.f32 0.00390625, %v626_v14  ;;  %v628_v17 = vmul.f32 %v2014_v30, %v2014_v30  ;;  %v786_v19 = vadd.f32 %v785_v10, %v784_v4  ;;  %v794_v21 = vrot.slane %v793_v47, 2 }
 0x1b9   : > { %v671_v31 = vsel %vm670_vm5, %v667_v26, %v660_v22  ;;  %v706_v34 = vsel %vm670_vm5, %v703_v25, %v696_v29  ;;  %v765_v40 = vrot.slane %v764_v35, 2  ;;  %v758_v41 = vrot.slane %v757_v36, 2 }
 0x1ba   : > { %v673_v32 = vadd.f32 %v671_v31, %v635_v23  ;;  %v2089_v22 = vsub.f32 %v627_v16, %v628_v17  ;;  %v787_v24 = vrot.slane %v786_v19, 2  ;;  %v795_v26 = vadd.f32 %v794_v21, %v793_v47 }
 0x1bb   : > { %v766_v52 = vadd.f32 %v765_v40, %v764_v35  ;;  %v759_v53 = vadd.f32 %v758_v41, %v757_v36  ;;  %v841_v35 = vmul.f32 %v779_v27, %v2058_v9 }
 0x1bc   : > { %v708_v37 = vadd.f32 %v706_v34, %v673_v32  ;;  %v788_v29 = vadd.f32 %v787_v24, %v786_v19  ;;  %v796_v34 = vrot.slane %v795_v26, 1 }
 0x1bd   : > { %v767_v62 = vrot.slane %v766_v52, 1  ;;  %v760_v63 = vrot.slane %v759_v53, 1 }
 0x1be   : > { %v724_v38 = vmul.f32 %v2051_v0, %v708_v37  ;;  %911 = vst.msk [vmem:[#allocation18] sm:$0x3] %vm653_vm4, %v708_v37  ;;  %v723_v39 = vmul.f32 %v2053_v1, %v708_v37 }
 0x1bf   : > { %v768_v7 = vadd.f32 %v767_v62, %v766_v52  ;;  %v761_v8 = vadd.f32 %v760_v63, %v759_v53 }
 0x1c0   : > { %v732_v42 = vsel %vm653_vm4, %v724_v38, 0.0  ;;  %v725_v43 = vsel %vm653_vm4, %v723_v39, 0.0  ;;  %v840_v38 = vmul.f32 %v779_v27, %v2061_v13  ;;  %v789_v39 = vrot.slane %v788_v29, 1 }
 0x1c1   : > { %v733_v45 = vrot.slane %v732_v42, 4  ;;  %v726_v48 = vrot.slane %v725_v43, 4 }
 0x1c2   : > { %v842_v44 = vsel %vm653_vm4, %v840_v38, 0.0 }
 0x1c3   : > { %v734_v50 = vadd.f32 %v733_v45, %v732_v42  ;;  %v727_v51 = vadd.f32 %v726_v48, %v725_v43  ;;  %v790_v45 = vadd.f32 %v789_v39, %v788_v29  ;;  %v843_v52 = vrot.slane %v842_v44, 4 }
 0x1c5   : > { %v735_v56 = vrot.slane %v734_v50, 2  ;;  %v728_v57 = vrot.slane %v727_v51, 2 }
 0x1c7   : > { %v736_v60 = vadd.f32 %v735_v56, %v734_v50  ;;  %v729_v61 = vadd.f32 %v728_v57, %v727_v51  ;;  %v780_v50 = vmul.f32 0.998001, %v779_v27 }
 0x1c9   : > { %v737_v2 = vrot.slane %v736_v60, 1  ;;  %v730_v3 = vrot.slane %v729_v61, 1 }
 0x1cb   : > { %v738_v55 = vadd.f32 %v737_v2, %v736_v60  ;;  %v731_v6 = vadd.f32 %v730_v3, %v729_v61  ;;  %v844_v60 = vadd.f32 %v843_v52, %v842_v44 }
 0x1cd   : > { %v770_v11 = vadd.f32 %v768_v7, %v738_v55  ;;  %v769_v12 = vadd.f32 %v761_v8, %v731_v6  ;;  %v845_v4 = vrot.slane %v844_v60, 2 }
 0x1cf   : > { %v2080_v15 = vsel %vm670_vm5, %v770_v11, %v769_v12  ;;  %v846_v10 = vadd.f32 %v845_v4, %v844_v60 }
 0x1d0   : > { %v2086_v18 = vsub.f32 %v2014_v30, %v2080_v15 }
 0x1d2   : > { %v776_v20 = vmul.f32 0.999, %v2086_v18 }
 0x1d4   : > { %v777_v23 = vmul.f32 %v776_v20, %v2086_v18 }
 0x1d6   : > { %v778_v25 = vadd.f32 %v777_v23, %v2089_v22 }
 0x1d8   : > { %v803_v28 = vmul.f32 %v778_v25, %v2036_v46  ;;  %v804_v30 = vmul.f32 %v778_v25, %v2045_v54  ;;  %910 = vst.msk [vmem:[#allocation17] sm:$0x3] %vm653_vm4, %v778_v25  ;;  %v797_v46 = vadd.f32 %v796_v34, %v795_v26  ;;  %v849_v54 = vsel %vm653_vm4, %v841_v35, 0.0 }
 0x1d9   : > { %v850_v51 = vrot.slane %v849_v54, 4 }
 0x1da   : > { %v805_v31 = vsel %vm653_vm4, %v803_v28, 0.0  ;;  %v812_v32 = vsel %vm653_vm4, %v804_v30, 0.0  ;;  %v800_v9 = vsel %vm670_vm5, %v797_v46, %v790_v45 }
 0x1db   : > { %v806_v36 = vrot.slane %v805_v31, 4  ;;  %v813_v37 = vrot.slane %v812_v32, 4  ;;  %v802_v58 = vadd.f32 %v800_v9, %v780_v50  ;;  %v851_v59 = vadd.f32 %v850_v51, %v849_v54 }
 0x1dd   : > { %v807_v40 = vadd.f32 %v806_v36, %v805_v31  ;;  %v814_v41 = vadd.f32 %v813_v37, %v812_v32  ;;  %v852_v3 = vrot.slane %v851_v59, 2  ;;  %v1183_v31 = vld [vmem:[#allocation11] ss:$0 sm:$0xff]  ;;  %v863_v32 = vld [vmem:[#allocation12] sm:$0x1]  ;;  %v876_v37 = vmul.f32 %v2086_v18, %v2086_v18 }
 0x1de   : > { %v884_v38 = vrot.slane %v863_v32, %v2022_v33 }
 0x1df   : > { %v808_v42 = vrot.slane %v807_v40, 2  ;;  %v815_v43 = vrot.slane %v814_v41, 2  ;;  %v853_v8 = vadd.f32 %v852_v3, %v851_v59  ;;  %v877_v54 = vadd.f32 %v876_v37, %v2089_v22 }
 0x1e1   : > { %v809_v48 = vadd.f32 %v808_v42, %v807_v40  ;;  %v816_v49 = vadd.f32 %v815_v43, %v814_v41  ;;  %v854_v16 = vrot.slane %v853_v8, 1  ;;  %v889_v41 = vmul.f32 %v863_v32, %v863_v32 }
 0x1e3   : > { %v810_v53 = vrot.slane %v809_v48, 1  ;;  %v817_v13 = vrot.slane %v816_v49, 1  ;;  %v855_v21 = vadd.f32 %v854_v16, %v853_v8 }
 0x1e5   : > { %v811_v56 = vadd.f32 %v810_v53, %v809_v48  ;;  %v818_v57 = vadd.f32 %v817_v13, %v816_v49  ;;  %v894_v48 = vrot.slane %v889_v41, %v2022_v33 }
 0x1e7   : > { %v821_v61 = vsel %vm670_vm5, %v818_v57, %v811_v56 }
 0x1e8   : > { %v823_v62 = vadd.f32 %v821_v61, %v802_v58 }
 0x1ea   : > { %v824_v63 = vmul.f32 %v823_v62, %v2053_v1  ;;  %v825_v2 = vmul.f32 %v823_v62, %v2051_v0  ;;  %912 = vst.msk [vmem:[#allocation20] sm:$0x3] %vm653_vm4, %v823_v62  ;;  %v847_v1 = vrot.slane %v846_v10, 1 }
 0x1ec   : > { %v826_v5 = vsel %vm653_vm4, %v824_v63, 0.0  ;;  %v833_v55 = vsel %vm653_vm4, %v825_v2, 0.0  ;;  %v848_v23 = vadd.f32 %v847_v1, %v846_v10 }
 0x1ed   : > { %v827_v6 = vrot.slane %v826_v5, 4  ;;  %v834_v7 = vrot.slane %v833_v55, 4 }
 0x1ef   : > { %v828_v11 = vadd.f32 %v827_v6, %v826_v5  ;;  %v835_v12 = vadd.f32 %v834_v7, %v833_v55 }
 0x1f1   : > { %v829_v14 = vrot.slane %v828_v11, 2  ;;  %v836_v47 = vrot.slane %v835_v12, 2 }
 0x1f3   : > { %v830_v17 = vadd.f32 %v829_v14, %v828_v11  ;;  %v837_v0 = vadd.f32 %v836_v47, %v835_v12 }
 0x1f5   : > { %v831_v19 = vrot.slane %v830_v17, 1  ;;  %v838_v20 = vrot.slane %v837_v0, 1 }
 0x1f7   : > { %v832_v24 = vadd.f32 %v831_v19, %v830_v17  ;;  %v839_v25 = vadd.f32 %v838_v20, %v837_v0 }
 0x1f9   : > { %v856_v26 = vadd.f32 %v848_v23, %v832_v24  ;;  %v857_v27 = vadd.f32 %v855_v21, %v839_v25 }
 0x1fb   : > { %v858_v28 = vadd.f32 1e-05, %v856_v26  ;;  %v859_v30 = vadd.f32 1e-05, %v857_v27 }
 0x1fd   : > { %1365 = vrsqrt.f32 %v858_v28 }
 0x1fe   : > { %1367 = vrsqrt.f32 %v859_v30 }
 0x20a   : > { %v1366_v29 = vpop.eup %1365 }
 0x20b   : > { %v1368_v34 = vpop.eup %1367 }
 0x20c   : > { %v872_v35 = vsel %vm670_vm5, %v1368_v34, %v1366_v29 }
 0x20d   : > { %v874_v36 = vmul.f32 %v1183_v31, %v872_v35 }
 0x20f   : > { %v875_v39 = vmul.f32 %v874_v36, %v874_v36  ;;  %v879_v40 = vmul.f32 2.0, %v874_v36  ;;  %v905_v46 = vmul.f32 %v874_v36, %v2080_v15 }
 0x211   : > { %v886_v42 = vmul.f32 %v884_v38, %v879_v40  ;;  %v906_v43 = vsub.f32 %v884_v38, %v905_v46  ;;  %v878_v44 = vmul.f32 %v877_v54, %v875_v39 }
 0x213   : > { %v887_v45 = vmul.f32 %v886_v42, %v2086_v18 }
 0x215   : > { %v888_v49 = vadd.f32 %v887_v45, %v878_v44 }
 0x217   : > { %v896_v50 = vadd.f32 %v894_v48, %v888_v49 }
 0x219   : > { %v897_v51 = vsel %vm653_vm4, %v896_v50, 0.0 }
 0x21a   : > { %898 = vadd.xlane.f32.xlu0 %v897_v51 }
 0x2a3   : > { %v899_v9 = vpop.xlane.xlu0 %898 }
 0x2a4   : > { %v900_v52 = vmul.f32 0.25, %v899_v9 }
 0x2a6   : > { %v901_v53 = vadd.f32 1e-05, %v900_v52 }
 0x2a8   : > { %1369 = vrsqrt.f32 %v901_v53 }
 0x2b5   : > { %v1370_v13 = vpop.eup %1369 }
 0x2b6   : > { %v903_v15 = vmul.f32 %v1370_v13, %v874_v36  ;;  %v907_v56 = vmul.f32 %v1370_v13, %v906_v43 }
 0x2b8   : > { %904 = vst.msk [vmem:[#allocation4] sm:$0x3] %vm653_vm4, %v903_v15  ;;  %908 = vst.msk [vmem:[#allocation5] sm:$0x3] %vm653_vm4, %v907_v56 }
 0x2b9 PF: > { %p1184_p3 = scmp.ne.s32.totalorder %s1697_s25, 1 }
 0x2bb   : > { %915 = sbr.rel (%p1184_p3) target bundleno = 836 (0x344), region = 96 }
 0x2c0   : > { %v919_v33 = vlaneseq  ;;  %v918_v22 = vld [vmem:[#allocation4] sm:$0x3]  ;;  %v935_v57 = vld [vmem:[#allocation5] sm:$0x3]  ;;  %v916_v2 = vld [vmem:[%s1985_s18] sm:$0xf] }
 0x2c1   : > { %v917_v55 = vld [vmem:[%s1985_s18 + $0x4] sm:$0xf] }
 0x2c2   : > { %v920_v18 = vshrl.u32 %v919_v33, 7 }
 0x2c4   : > { %v921_v58 = vsub.s32 0, %v920_v18  ;;  %v928_v59 = vsub.s32 1, %v920_v18 }
 0x2c6   : > { %v922_v60 = vrot.slane %v918_v22, %v921_v58  ;;  %v939_v61 = vrot.slane %v935_v57, %v921_v58  ;;  %v929_v62 = vrot.slane %v918_v22, %v928_v59  ;;  %v946_v63 = vrot.slane %v935_v57, %v928_v59 }
 0x2c8   : > { %924 = vbcast.lane.b32.xlu0 %v922_v60, 256  ;;  %941 = vbcast.lane.b32.xlu1 %v939_v61, 256 }
 0x2cc   : > { %931 = vbcast.lane.b32.xlu0 %v929_v62, 256  ;;  %948 = vbcast.lane.b32.xlu1 %v946_v63, 256 }
 0x33a   : > { %v925_v3 = vpop.permute.xlu0 %924  ;;  %v942_v4 = vpop.permute.xlu1 %941 }
 0x33b   : > { %v933_v5 = vmul.f32 %v925_v3, %v916_v2 }
 0x33d   : > { %v950_v6 = vadd.f32 %v942_v4, %v933_v5 }
 0x33e   : > { %v932_v7 = vpop.permute.xlu0 %931  ;;  %v949_v8 = vpop.permute.xlu1 %948 }
 0x33f   : > { %952 = vst [vmem:[%s2006_s10] sm:$0xf] %v950_v6  ;;  %v934_v10 = vmul.f32 %v932_v7, %v917_v55 }
 0x341   : > { %v951_v11 = vadd.f32 %v949_v8, %v934_v10 }
 0x343   : > { %953 = vst [vmem:[%s2006_s10 + $0x4] sm:$0xf] %v951_v11 }
 0x344 PF: > { %s1719_s30 = smov [#allocation15]   ;;  %s2312_s21 = sld [smem:[#allocation31_spill]] }
 0x345   : > { %s982_s29 = sshll.u32 %s1719_s30, 4  ;;  %s1720_s5 = smov [#allocation18]   ;;  %s983_s29 = int_to_ptr.vmem [resolvable:$true] %s982_s29 }
 0x346   : > { %s1004_s2 = sshll.u32 %s1720_s5, 4  ;;  %s1477_s3 = scalar_lea.vmem %s983_s29, 32  ;;  %s1005_s2 = int_to_ptr.vmem [resolvable:$true] %s1004_s2 }
 0x347   : > { %p1478_p12 = scmp.ne.s32.totalorder %s983_s29, %s1477_s3  ;;  %p1484_p13 = scmp.lt.s32.totalorder %s983_s29, %s983_s29 }
 0x348   : > { %p1485_p6 = scmp.lt.s32.totalorder %s1477_s3, %s1477_s3 }
 0x34a   : > { %p2313_p1 = scmp.ne.s32.totalorder %s2312_s21, 0  ;;  %p1486_p0 = por %p1485_p6, %p1484_p13 }
 0x34c   : > { %p1479_p4 = pnand %p1478_p12, %p2313_p1 }
 0x34e   : > { %p1480_p2 = pneg %p1479_p4 }
 0x350   : > { %p1487_p8 = pnand %p1486_p0, %p1480_p2 }
 0x352   : > { %1490 = shalt.err (!%p1487_p8)
}
 0x353   : > { %s2314_s27 = sld [smem:[#allocation43_spill]]  ;;  %s1501_s28 = scalar_lea.vmem %s1005_s2, 32 }
 0x354   : > { %p1502_p9 = scmp.ne.s32.totalorder %s1005_s2, %s1501_s28  ;;  %p1508_p10 = scmp.lt.s32.totalorder %s1005_s2, %s1005_s2 }
 0x355   : > { %p1509_p7 = scmp.lt.s32.totalorder %s1501_s28, %s1501_s28 }
 0x356   : > { %p1503_p5 = pnand %p1502_p9, %p2313_p1 }
 0x357   : > { %p1510_p3 = por %p1509_p7, %p1508_p10 }
 0x358   : > { %p1504_p11 = pneg %p1503_p5 }
 0x359   : > { %1213 = dma.vmem_to_hbm [thread:$0]  (%p2313_p1), %s983_s29, 32, %s2314_s27, [#allocation16]  }
 0x35a   : > { %p1511_p12 = pnand %p1510_p3, %p1504_p11 }
 0x35c   : > { %1514 = shalt.err (!%p1511_p12)
}
 0x35d   : > { %s2315_s11 = sld [smem:[#allocation45_spill]]  ;;  %s962_s16 = smul.u32 %s1693_s24, %s1697_s25 }
 0x35e   : > { %s2316_s14 = sld [smem:[#allocation32_spill]]  ;;  %s968_s17 = sshll.u32 %s2006_s10, 4  ;;  %s2145_s17 = int_to_ptr.vmem [resolvable:$true] %s968_s17 }
 0x35f   : > { %s1186_s30 = sshll.u32 %s962_s16, 6  ;;  %s2317_s3 = sld [smem:[#allocation42_spill]] }
 0x360   : > { %s2154_s26 = scalar_lea.sflag [#allocation8], %s544_s1  ;;  %s1525_s27 = scalar_lea.vmem %s2145_s17, 128 }
 0x361   : > { %p1526_p4 = scmp.ne.s32.totalorder %s2145_s17, %s1525_s27  ;;  %s1721_s24 = smov [#allocation14]  }
 0x362   : > { %s1529_s25 = sshll.u32 %s1721_s24, 4  ;;  %s1530_s25 = int_to_ptr.vmem [resolvable:$false] %s1529_s25 }
 0x363   : > { %1217 = dma.vmem_to_hbm [thread:$0]  (%p2313_p1), %s1005_s2, 32, %s2315_s11, [#allocation19]  }
 0x364   : > { %p2318_p2 = scmp.ne.s32.totalorder %s2316_s14, 0  ;;  %s1531_s10 = scalar_lea.vmem %s1530_s25, 256 }
 0x365   : > { %s2150_s18 = scalar_lea.hbm %s2317_s3, %s1186_s30  ;;  %p1532_p0 = scmp.lt.s32.totalorder %s2145_s17, %s1530_s25 }
 0x366   : > { %p1527_p13 = pnand %p1526_p4, %p2318_p2  ;;  %p1533_p8 = scmp.lt.s32.totalorder %s1531_s10, %s1525_s27 }
 0x368   : > { %p1528_p6 = pneg %p1527_p13  ;;  %p1534_p9 = por %p1533_p8, %p1532_p0 }
 0x36a   : > { %p1535_p5 = pnand %p1534_p9, %p1528_p6 }
 0x36c   : > { %1538 = shalt.err (!%p1535_p5)
}
 0x36d   : > { %s1539_s1 = scalar_lea.hbm %s2150_s18, 128  ;;  %s1543_s12 = scalar_lea.hbm %s2317_s3, 256 }
 0x36e   : > { %p1540_p11 = scmp.ne.s32.totalorder %s2150_s18, %s1539_s1  ;;  %p1544_p3 = scmp.lt.s32.totalorder %s2150_s18, %s2317_s3 }
 0x36f   : > { %p1545_p12 = scmp.lt.s32.totalorder %s1543_s12, %s1539_s1 }
 0x370   : > { %p1541_p10 = pnand %p1540_p11, %p2318_p2 }
 0x371   : > { %p1546_p4 = por %p1545_p12, %p1544_p3 }
 0x372   : > { %p1542_p7 = pneg %p1541_p10 }
 0x374   : > { %p1547_p13 = pnand %p1546_p4, %p1542_p7 }
 0x376   : > { %1550 = shalt.err (!%p1547_p13)
}
 0x377   : > { %s1722_s16 = smov 64   ;;  %s1723_s30 = smov 128  }
 0x378   : > { %s1724_s29 = smov 4   ;;  %s1725_s5 = smov [#allocation17]  }
 0x379   : > { %1211 = dma.vmem_to_hbm [thread:$0]  (%p2318_p2), %s2145_s17, 128, %s2150_s18, %s2154_s26, %s1722_s16, %s1723_s30, %s1724_s29  }
 0x37a   : > { %s993_s27 = sshll.u32 %s1725_s5, 4  ;;  %s1726_s24 = smov [#allocation20]   ;;  %s994_s27 = int_to_ptr.vmem [resolvable:$true] %s993_s27 }
 0x37b   : > { %s1015_s25 = sshll.u32 %s1726_s24, 4  ;;  %s1551_s10 = scalar_lea.vmem %s994_s27, 32  ;;  %s1016_s25 = int_to_ptr.vmem [resolvable:$true] %s1015_s25 }
 0x37c   : > { %p1552_p6 = scmp.ne.s32.totalorder %s994_s27, %s1551_s10  ;;  %p1558_p9 = scmp.lt.s32.totalorder %s994_s27, %s994_s27 }
 0x37d   : > { %p1559_p5 = scmp.lt.s32.totalorder %s1551_s10, %s1551_s10 }
 0x37e   : > { %p1553_p0 = pnand %p1552_p6, %p2313_p1 }
 0x37f   : > { %p1560_p11 = por %p1559_p5, %p1558_p9 }
 0x380   : > { %p1554_p8 = pneg %p1553_p0 }
 0x382   : > { %p1561_p10 = pnand %p1560_p11, %p1554_p8 }
 0x384   : > { %1564 = shalt.err (!%p1561_p10)
}
 0x385   : > { %s2319_s18 = sld [smem:[#allocation44_spill]]  ;;  %s1575_s26 = scalar_lea.vmem %s1016_s25, 32 }
 0x386   : > { %p1576_p2 = scmp.ne.s32.totalorder %s1016_s25, %s1575_s26  ;;  %p1582_p12 = scmp.lt.s32.totalorder %s1016_s25, %s1016_s25 }
 0x387   : > { %p1583_p4 = scmp.lt.s32.totalorder %s1575_s26, %s1575_s26 }
 0x388   : > { %p1577_p7 = pnand %p1576_p2, %p2313_p1 }
 0x389   : > { %p1584_p13 = por %p1583_p4, %p1582_p12 }
 0x38a   : > { %p1578_p3 = pneg %p1577_p7 }
 0x38b   : > { %1215 = dma.vmem_to_hbm [thread:$0]  (%p2313_p1), %s994_s27, 32, %s2319_s18, [#allocation16]  }
 0x38c   : > { %p1585_p6 = pnand %p1584_p13, %p1578_p3 }
 0x38e   : > { %1588 = shalt.err (!%p1585_p6)
}
 0x38f   : > { %s2320_s28 = sld [smem:[#allocation46_spill]] }
 0x395   : > { %1219 = dma.vmem_to_hbm [thread:$0]  (%p2313_p1), %s1016_s25, 32, %s2320_s28, [#allocation19]  }
 0x396   : > { %1656 = dma.done.wait (%p2313_p1), [#allocation16], 64  }
 0x397   : > { %1658 = vsyncadd (%p2313_p1), [#allocation16], 4294967232 }
 0x398   : > { %1660 = dma.done.wait (%p2313_p1), [#allocation19], 64  }
 0x399   : > { %1662 = vsyncadd (%p2313_p1), [#allocation19], 4294967232 }
 0x39a PF: > { %s2321_s12 = sld [smem:[#allocation30_spill]] }
 0x39b   : > { %s2322_s9 = sld [smem:[#allocation27_spill]] }
 0x39c   : > { %s2323_s11 = sld [smem:[#allocation33_spill]] }
 0x3a0   : > { %p1262_p0 = scmp.ge.s32.totalorder %s2321_s12, 2 }
 0x3a1   : > { %s1043_s16 = sand.u32 1, %s2322_s9  }
 0x3a2   : > { %p2324_p8 = scmp.ne.s32.totalorder %s2323_s11, 0  ;;  %s1044_s30 = scalar_lea.sflag [#allocation8], %s1043_s16 }
 0x3a4   : > { %p1244_p9 = pnand %p1262_p0, %p2324_p8 }
 0x3a6   : > { %p1245_p5 = pneg %p1244_p9 }
 0x3a8   : > { %1664 = dma.done.wait (%p1245_p5), %s1044_s30, 128  }
 0x3a9   : > { %1666 = vsyncadd (%p1245_p5), %s1044_s30, 4294967168  ;;  %s36_s28 = sadd.s32 1, %s2321_s12   ;;  %s2325_s24 = sld [smem:[#allocation28_spill]] }
 0x3aa   : > { %p33_p11 = scmp.ge.s32.totalorder %s36_s28, 6   ;;  %s2326_s25 = sld [smem:[#allocation29_spill]] }
 0x3ab   : > { %s2327_s18 = smov %s1673_s19  ;;  %s2328_s19 = smov %s1677_s20 }
 0x3ac   : > { %s2329_s20 = smov %s1975_s13  ;;  %s2330_s21 = smov %s1685_s22 }
 0x3ad   : > { %s2331_s22 = smov %s1689_s23  ;;  %s2332_s23 = smov %s1968_s6 }
 0x3ae   : > { %s2333_s26 = smov %s2336_s15  ;;  %s2334_s27 = smov %s2340_s4 }
 0x3af   :  { %35 = sbr.rel (!%p33_p11) target bundleno = 27 (0x1b), region = 169 }
 0x3b4   :  { %1049 = vsyncpa [#allocation7], 1 }
 0x3b5   :  { %1051 = vsyncpa [#allocation7 + $0x1], 1 }
 0x3b6   :  { %1052 = vsyncpa [#allocation10], 1 }
 0x3b7   :  { %1053 = vsyncpa [#allocation13], 1 }
 0x3b8   :  { %1054 = vsyncpa [#allocation8], 1 }
 0x3b9   :  { %1056 = vsyncpa [#allocation8 + $0x1], 1 }
 0x3ba   :  { %1057 = vsyncpa [#allocation16], 1 }
 0x3bb   :  { %1058 = vsyncpa [#allocation19], 1 }

</bundles_post_ra>
